<compile_context>
chip_gen: v6e
topology: v6e:2x2x1
jax: 0.10.0
libtpu: 0.0.40
codegen_flags: <defaults>
</compile_context>

<pallas_src>
import jax
import jax.numpy as jnp
from jax.experimental import pallas as pl
from jax.experimental.pallas import tpu as pltpu


def _round_up(x, m):
    return (x + m - 1) // m * m


def _time_chunk(T, cap=16):
    """Largest divisor of T that is <= cap (timesteps handled per grid step)."""
    for tt in range(min(T, cap), 0, -1):
        if T % tt == 0:
            return tt
    return 1


# ------------------- tiled matmul + bias (MXU, fully parallel grid) -------------------
def _matmul_bias_kernel(x_ref, w_ref, b_ref, o_ref):
    o_ref[...] = (jnp.dot(x_ref[...], w_ref[...],
                          preferred_element_type=jnp.float32)
                  + b_ref[...]).astype(o_ref.dtype)


def matmul_bias(x, w_t, b, *, tm=256, tn=256):
    """x: (M, K) @ w_t: (K, N) + b: (1, N) -> (M, N), tiled over M and N."""
    M, K = x.shape
    N = w_t.shape[1]
    TM = min(tm, _round_up(M, 8))
    TN = min(tn, _round_up(N, 128))
    Mp, Np = _round_up(M, TM), _round_up(N, TN)
    if Mp != M:
        x = jnp.pad(x, ((0, Mp - M), (0, 0)))
    if Np != N:
        w_t = jnp.pad(w_t, ((0, 0), (0, Np - N)))
        b = jnp.pad(b, ((0, 0), (0, Np - N)))
    out = pl.pallas_call(
        _matmul_bias_kernel,
        out_shape=jax.ShapeDtypeStruct((Mp, Np), jnp.float32),
        grid_spec=pltpu.PrefetchScalarGridSpec(
            num_scalar_prefetch=0,
            grid=(Mp // TM, Np // TN),
            in_specs=[
                pl.BlockSpec((TM, K), lambda i, j: (i, 0)),
                pl.BlockSpec((K, TN), lambda i, j: (0, j)),
                pl.BlockSpec((1, TN), lambda i, j: (0, j)),
            ],
            out_specs=pl.BlockSpec((TM, TN), lambda i, j: (i, j)),
        ),
        compiler_params=pltpu.CompilerParams(
            dimension_semantics=("parallel", "parallel")),  # megacore-shardable
    )(x, w_t, b)
    if (Mp, Np) != (M, N):
        out = out[:M, :N]
    return out


# ----------------------- LSTM recurrence (hoisted input projection) -------------------
def _lstm_recurrence_kernel(gx_ref, h0_ref, c0_ref, whh_ref,
                            y_ref, hN_ref, cN_ref, h_sc, c_sc):
    tc = pl.program_id(0)

    @pl.when(tc == 0)
    def _():
        h_sc[...] = h0_ref[...]
        c_sc[...] = c0_ref[...]

    H = h_sc.shape[-1]
    TT = y_ref.shape[0]

    def step(s, carry):
        # Single MXU op per step: h @ W_hh^T; x @ W_ih^T + bias was precomputed.
        gates = (jnp.dot(h_sc[...], whh_ref[...],
                         preferred_element_type=jnp.float32)
                 + gx_ref[s])                                    # (B, 4H)
        # TODO(synk): for non-toy sizes keep H a multiple of 128 (or use a
        # (4, B, H) gate layout) so these slices are lane-aligned full-vreg ops.
        i = jax.nn.sigmoid(gates[:, 0 * H:1 * H])
        f = jax.nn.sigmoid(gates[:, 1 * H:2 * H])
        g = jnp.tanh(gates[:, 2 * H:3 * H])
        o = jax.nn.sigmoid(gates[:, 3 * H:4 * H])
        c_new = f * c_sc[...] + i * g
        h_new = o * jnp.tanh(c_new)
        c_sc[...] = c_new
        h_sc[...] = h_new
        y_ref[s] = h_new
        return carry

    # Unrolled so the LLO scheduler can pipeline the per-step matmuls.
    jax.lax.fori_loop(0, TT, step, 0, unroll=True)

    @pl.when(tc == pl.num_programs(0) - 1)
    def _():
        hN_ref[...] = h_sc[...]
        cN_ref[...] = c_sc[...]


def lstm_recurrence(gx, h0, c0, whh_t):
    """Serial LSTM scan.  gx: (T, B, 4H) precomputed x@W_ih+bias -> (y, h_n, c_n)."""
    T, B, G = gx.shape
    H = h0.shape[-1]
    TT = _time_chunk(T, cap=16)
    return pl.pallas_call(
        _lstm_recurrence_kernel,
        out_shape=(jax.ShapeDtypeStruct((T, B, H), jnp.float32),
                   jax.ShapeDtypeStruct((B, H), jnp.float32),
                   jax.ShapeDtypeStruct((B, H), jnp.float32)),
        grid_spec=pltpu.PrefetchScalarGridSpec(
            num_scalar_prefetch=0,
            grid=(T // TT,),
            in_specs=[
                pl.BlockSpec((TT, B, G), lambda t: (t, 0, 0)),   # gates_x chunk
                pl.BlockSpec((B, H), lambda t: (0, 0)),          # h0 (fetched once)
                pl.BlockSpec((B, H), lambda t: (0, 0)),          # c0 (fetched once)
                pl.BlockSpec((H, G), lambda t: (0, 0)),          # W_hh^T (resident)
            ],
            out_specs=[
                pl.BlockSpec((TT, B, H), lambda t: (t, 0, 0)),   # time-chunked y slab
                pl.BlockSpec((B, H), lambda t: (0, 0)),
                pl.BlockSpec((B, H), lambda t: (0, 0)),
            ],
            scratch_shapes=[pltpu.VMEM((B, H), jnp.float32),     # h carry
                            pltpu.VMEM((B, H), jnp.float32)],    # c carry
        ),
        compiler_params=pltpu.CompilerParams(
            dimension_semantics=("arbitrary",)),  # time is a true recurrence
        # TODO(synk): on v7x add a leading "parallel" batch grid axis (2nd TC)
        # and cast weights to bf16 (f32 accumulate) to fit 64 MiB VMEM at big H.
    )(gx, h0, c0, whh_t)


# ----------------------------------- Poem wrapper --------------------------------------
def init_poem_params(key, vocabulary_dim, embedding_dim=256, hidden_dim=512,
                     num_layers=3):
    keys = jax.random.split(key, 3 + 4 * num_layers)
    k = 1.0 / jnp.sqrt(hidden_dim)

    params = {
        # nn.Embedding: N(0, 1)
        "embedding": jax.random.normal(
            keys[0], (vocabulary_dim, embedding_dim), jnp.float32),
        "wih_t": [], "whh_t": [], "bias": [],
    }
    # nn.LSTM params, U(-1/sqrt(H), 1/sqrt(H)), gate order (i, f, g, o).
    for l in range(num_layers):
        d_in = embedding_dim if l == 0 else hidden_dim
        kw = keys[3 + 4 * l: 3 + 4 * (l + 1)]
        wih = jax.random.uniform(kw[0], (4 * hidden_dim, d_in), jnp.float32, -k, k)
        whh = jax.random.uniform(kw[1], (4 * hidden_dim, hidden_dim),
                                 jnp.float32, -k, k)
        b_ih = jax.random.uniform(kw[2], (4 * hidden_dim,), jnp.float32, -k, k)
        b_hh = jax.random.uniform(kw[3], (4 * hidden_dim,), jnp.float32, -k, k)
        params["wih_t"].append(wih.T)                  # (d_in, 4H)
        params["whh_t"].append(whh.T)                  # (H, 4H)
        params["bias"].append((b_ih + b_hh)[None, :])  # (1, 4H), folded into gates_x
    # nn.Linear(hidden_dim, vocabulary_dim)
    w = jax.random.uniform(keys[1], (vocabulary_dim, hidden_dim), jnp.float32, -k, k)
    params["lin_w_t"] = w.T                            # (H, V)
    params["lin_b"] = jax.random.uniform(keys[2], (1, vocabulary_dim),
                                         jnp.float32, -k, k)
    return params


@jax.jit
def poem_forward(params, inputs, hidden=None):
    """inputs: (T, B) int32 token ids.  Returns (logits (T*B, V), (h_n, c_n))."""
    T, B = inputs.shape
    L = len(params["wih_t"])
    H = params["whh_t"][0].shape[0]
    if hidden is None:
        h0 = jnp.zeros((L, B, H), jnp.float32)
        c0 = jnp.zeros((L, B, H), jnp.float32)
    else:
        h0, c0 = hidden

    # Embedding gather (glue, not the hot path).
    x = jnp.take(params["embedding"], inputs, axis=0)          # (T, B, E)

    h_n, c_n = [], []
    for l in range(L):
        d_in = x.shape[-1]
        # Hoisted input projection: one big batched MXU matmul per layer.
        gx = matmul_bias(x.reshape(T * B, d_in),
                         params["wih_t"][l], params["bias"][l])  # (T*B, 4H)
        gx = gx.reshape(T, B, 4 * H)
        x, h_l, c_l = lstm_recurrence(gx, h0[l], c0[l], params["whh_t"][l])
        h_n.append(h_l)
        c_n.append(c_l)

    # Final vocabulary projection, tiled over (T*B, V).
    logits = matmul_bias(x.reshape(T * B, H), params["lin_w_t"], params["lin_b"])
    return logits, (jnp.stack(h_n, axis=0), jnp.stack(c_n, axis=0))


if __name__ == "__main__":
    # Small shapes consistent with the module's forward.
    VOCAB, EMBED, HIDDEN, LAYERS = 64, 32, 32, 2
    SEQ, BATCH = 8, 2

    key = jax.random.PRNGKey(0)
    pkey, ikey = jax.random.split(key)
    params = init_poem_params(pkey, VOCAB, EMBED, HIDDEN, LAYERS)
    tokens = jax.random.randint(ikey, (SEQ, BATCH), 0, VOCAB, jnp.int32)

    logits, (h_n, c_n) = poem_forward(params, tokens)
    jax.block_until_ready((logits, h_n, c_n))

    assert logits.shape == (SEQ * BATCH, VOCAB)
    assert h_n.shape == (LAYERS, BATCH, HIDDEN)
    assert c_n.shape == (LAYERS, BATCH, HIDDEN)
    assert bool(jnp.all(jnp.isfinite(logits)))
    print("KERNEL_OK")
</pallas_src>

<mosaic_0001>
module attributes {stable_mosaic.version = 11 : i64} {
  func.func @_matmul_bias_kernel(%arg0: i32, %arg1: i32, %arg2: memref<16x32xf32, #tpu.memory_space<vmem>>, %arg3: memref<32x128xf32, #tpu.memory_space<vmem>>, %arg4: memref<1x128xf32, #tpu.memory_space<vmem>>, %arg5: memref<16x128xf32, #tpu.memory_space<vmem>>) attributes {dimension_semantics = [#tpu.dimension_semantics<parallel>, #tpu.dimension_semantics<parallel>], iteration_bounds = array<i64: 1, 1>, scalar_prefetch = 0 : i64, scratch_operands = 0 : i64, tpu.core_type = #tpu.core_type<tc>, window_params = [{transform_indices = @transform_0, window_bounds = array<i64: 16, 32>}, {transform_indices = @transform_1, window_bounds = array<i64: 32, 128>}, {transform_indices = @transform_2, window_bounds = array<i64: 1, 128>}, {transform_indices = @transform_3, window_bounds = array<i64: 16, 128>}]} {
    %c0 = arith.constant 0 : index
    %c0_0 = arith.constant 0 : index
    %0 = vector.load %arg2[%c0, %c0_0] : memref<16x32xf32, #tpu.memory_space<vmem>>, vector<16x32xf32>
    %c0_1 = arith.constant 0 : index
    %c0_2 = arith.constant 0 : index
    %1 = vector.load %arg3[%c0_1, %c0_2] : memref<32x128xf32, #tpu.memory_space<vmem>>, vector<32x128xf32>
    %cst = arith.constant dense<0.000000e+00> : vector<16x128xf32>
    %2 = tpu.matmul %0, %1, %cst {dimension_numbers = #tpu.dot_dimension_numbers<[1], [0], [0], [1], [0, 0, 1, 1], [], []>} : vector<16x32xf32>, vector<32x128xf32>, vector<16x128xf32> -> vector<16x128xf32>
    %c0_3 = arith.constant 0 : index
    %c0_4 = arith.constant 0 : index
    %3 = vector.load %arg4[%c0_3, %c0_4] : memref<1x128xf32, #tpu.memory_space<vmem>>, vector<1x128xf32>
    %4 = vector.broadcast %3 : vector<1x128xf32> to vector<16x128xf32>
    %5 = arith.addf %2, %4 : vector<16x128xf32>
    %c0_5 = arith.constant 0 : index
    %c0_6 = arith.constant 0 : index
    %6 = vector.load %arg5[%c0_5, %c0_6] : memref<16x128xf32, #tpu.memory_space<vmem>>, vector<16x128xf32>
    tpu.vector_store %arg5[%c0_5, %c0_6], %5 {strides = array<i32>} : memref<16x128xf32, #tpu.memory_space<vmem>>, vector<16x128xf32>,
    return
  }
  func.func @transform_0(%arg0: i32, %arg1: i32) -> (i32, i32) {
    %c0_i32 = arith.constant 0 : i32
    %c0_i32_0 = arith.constant 0 : i32
    return %arg0, %c0_i32 : i32, i32
  }
  func.func @transform_1(%arg0: i32, %arg1: i32) -> (i32, i32) {
    %c0_i32 = arith.constant 0 : i32
    %c0_i32_0 = arith.constant 0 : i32
    return %c0_i32, %arg1 : i32, i32
  }
  func.func @transform_2(%arg0: i32, %arg1: i32) -> (i32, i32) {
    %c0_i32 = arith.constant 0 : i32
    %c0_i32_0 = arith.constant 0 : i32
    return %c0_i32, %arg1 : i32, i32
  }
  func.func @transform_3(%arg0: i32, %arg1: i32) -> (i32, i32) {
    %c0_i32 = arith.constant 0 : i32
    return %arg0, %arg1 : i32, i32
  }
}

module attributes {stable_mosaic.version = 11 : i64} {
  func.func @_matmul_bias_kernel(%arg0: i32, %arg1: i32, %arg2: memref<16x32xf32, #tpu.memory_space<vmem>>, %arg3: memref<32x128xf32, #tpu.memory_space<vmem>>, %arg4: memref<1x128xf32, #tpu.memory_space<vmem>>, %arg5: memref<16x128xf32, #tpu.memory_space<vmem>>) attributes {dimension_semantics = [#tpu.dimension_semantics<parallel>, #tpu.dimension_semantics<parallel>], iteration_bounds = array<i64: 1, 1>, scalar_prefetch = 0 : i64, scratch_operands = 0 : i64, tpu.core_type = #tpu.core_type<tc>, window_params = [{transform_indices = @transform_0, window_bounds = array<i64: 16, 32>}, {transform_indices = @transform_1, window_bounds = array<i64: 32, 128>}, {transform_indices = @transform_2, window_bounds = array<i64: 1, 128>}, {transform_indices = @transform_3, window_bounds = array<i64: 16, 128>}]} {
    %c0 = arith.constant 0 : index
    %c0_0 = arith.constant 0 : index
    %0 = vector.load %arg2[%c0, %c0_0] : memref<16x32xf32, #tpu.memory_space<vmem>>, vector<16x32xf32>
    %c0_1 = arith.constant 0 : index
    %c0_2 = arith.constant 0 : index
    %1 = vector.load %arg3[%c0_1, %c0_2] : memref<32x128xf32, #tpu.memory_space<vmem>>, vector<32x128xf32>
    %cst = arith.constant dense<0.000000e+00> : vector<16x128xf32>
    %2 = tpu.matmul %0, %1, %cst {dimension_numbers = #tpu.dot_dimension_numbers<[1], [0], [0], [1], [0, 0, 1, 1], [], []>} : vector<16x32xf32>, vector<32x128xf32>, vector<16x128xf32> -> vector<16x128xf32>
    %c0_3 = arith.constant 0 : index
    %c0_4 = arith.constant 0 : index
    %3 = vector.load %arg4[%c0_3, %c0_4] : memref<1x128xf32, #tpu.memory_space<vmem>>, vector<1x128xf32>
    %4 = vector.broadcast %3 : vector<1x128xf32> to vector<16x128xf32>
    %5 = arith.addf %2, %4 : vector<16x128xf32>
    %c0_5 = arith.constant 0 : index
    %c0_6 = arith.constant 0 : index
    %6 = vector.load %arg5[%c0_5, %c0_6] : memref<16x128xf32, #tpu.memory_space<vmem>>, vector<16x128xf32>
    tpu.vector_store %arg5[%c0_5, %c0_6], %5 {strides = array<i32>} : memref<16x128xf32, #tpu.memory_space<vmem>>, vector<16x128xf32>,
    return
  }
  func.func @transform_0(%arg0: i32, %arg1: i32) -> (i32, i32) {
    %c0_i32 = arith.constant 0 : i32
    %c0_i32_0 = arith.constant 0 : i32
    return %arg0, %c0_i32 : i32, i32
  }
  func.func @transform_1(%arg0: i32, %arg1: i32) -> (i32, i32) {
    %c0_i32 = arith.constant 0 : i32
    %c0_i32_0 = arith.constant 0 : i32
    return %c0_i32, %arg1 : i32, i32
  }
  func.func @transform_2(%arg0: i32, %arg1: i32) -> (i32, i32) {
    %c0_i32 = arith.constant 0 : i32
    %c0_i32_0 = arith.constant 0 : i32
    return %c0_i32, %arg1 : i32, i32
  }
  func.func @transform_3(%arg0: i32, %arg1: i32) -> (i32, i32) {
    %c0_i32 = arith.constant 0 : i32
    return %arg0, %arg1 : i32, i32
  }
}

module attributes {stable_mosaic.version = 11 : i64} {
  func.func @_lstm_recurrence_kernel(%arg0: i32, %arg1: memref<8x2x128xf32, #tpu.memory_space<vmem>>, %arg2: memref<2x32xf32, #tpu.memory_space<vmem>>, %arg3: memref<2x32xf32, #tpu.memory_space<vmem>>, %arg4: memref<32x128xf32, #tpu.memory_space<vmem>>, %arg5: memref<8x2x32xf32, #tpu.memory_space<vmem>>, %arg6: memref<2x32xf32, #tpu.memory_space<vmem>>, %arg7: memref<2x32xf32, #tpu.memory_space<vmem>>, %arg8: memref<2x32xf32, #tpu.memory_space<vmem>>, %arg9: memref<2x32xf32, #tpu.memory_space<vmem>>) attributes {dimension_semantics = [#tpu.dimension_semantics<arbitrary>], iteration_bounds = array<i64: 1>, scalar_prefetch = 0 : i64, scratch_operands = 2 : i64, tpu.core_type = #tpu.core_type<tc>, window_params = [{transform_indices = @transform_0, window_bounds = array<i64: 8, 2, 128>}, {pipeline_mode = #tpu.pipeline_mode<synchronous>, transform_indices = @transform_1, window_bounds = array<i64: 2, 32>}, {pipeline_mode = #tpu.pipeline_mode<synchronous>, transform_indices = @transform_2, window_bounds = array<i64: 2, 32>}, {pipeline_mode = #tpu.pipeline_mode<synchronous>, transform_indices = @transform_3, window_bounds = array<i64: 32, 128>}, {transform_indices = @transform_4, window_bounds = array<i64: 8, 2, 32>}, {pipeline_mode = #tpu.pipeline_mode<synchronous>, transform_indices = @transform_5, window_bounds = array<i64: 2, 32>}, {pipeline_mode = #tpu.pipeline_mode<synchronous>, transform_indices = @transform_6, window_bounds = array<i64: 2, 32>}]} {
    %c0_i32 = arith.constant 0 : i32
    %0 = arith.cmpi eq, %arg0, %c0_i32 : i32
    %1 = arith.extui %0 : i1 to i32
    %c0_i32_0 = arith.constant 0 : i32
    %2 = arith.cmpi ne, %1, %c0_i32_0 : i32
    scf.if %2 {
      %c0_146 = arith.constant 0 : index
      %c0_147 = arith.constant 0 : index
      %318 = vector.load %arg2[%c0_146, %c0_147] : memref<2x32xf32, #tpu.memory_space<vmem>>, vector<2x32xf32>
      %c0_148 = arith.constant 0 : index
      %c0_149 = arith.constant 0 : index
      %319 = vector.load %arg8[%c0_148, %c0_149] : memref<2x32xf32, #tpu.memory_space<vmem>>, vector<2x32xf32>
      tpu.vector_store %arg8[%c0_148, %c0_149], %318 {strides = array<i32>} : memref<2x32xf32, #tpu.memory_space<vmem>>, vector<2x32xf32>,
      %c0_150 = arith.constant 0 : index
      %c0_151 = arith.constant 0 : index
      %320 = vector.load %arg3[%c0_150, %c0_151] : memref<2x32xf32, #tpu.memory_space<vmem>>, vector<2x32xf32>
      %c0_152 = arith.constant 0 : index
      %c0_153 = arith.constant 0 : index
      %321 = vector.load %arg9[%c0_152, %c0_153] : memref<2x32xf32, #tpu.memory_space<vmem>>, vector<2x32xf32>
      tpu.vector_store %arg9[%c0_152, %c0_153], %320 {strides = array<i32>} : memref<2x32xf32, #tpu.memory_space<vmem>>, vector<2x32xf32>,
    } else {
    }
    %c0_i32_1 = arith.constant 0 : i32
    %c0 = arith.constant 0 : index
    %c0_2 = arith.constant 0 : index
    %3 = vector.load %arg8[%c0, %c0_2] : memref<2x32xf32, #tpu.memory_space<vmem>>, vector<2x32xf32>
    %c0_3 = arith.constant 0 : index
    %c0_4 = arith.constant 0 : index
    %4 = vector.load %arg4[%c0_3, %c0_4] : memref<32x128xf32, #tpu.memory_space<vmem>>, vector<32x128xf32>
    %cst = arith.constant dense<0.000000e+00> : vector<2x128xf32>
    %5 = tpu.matmul %3, %4, %cst {dimension_numbers = #tpu.dot_dimension_numbers<[1], [0], [0], [1], [0, 0, 1, 1], [], []>} : vector<2x32xf32>, vector<32x128xf32>, vector<2x128xf32> -> vector<2x128xf32>
    %6 = arith.index_cast %c0_i32_1 : i32 to index
    %c0_5 = arith.constant 0 : index
    %c0_6 = arith.constant 0 : index
    %7 = vector.load %arg1[%6, %c0_5, %c0_6] : memref<8x2x128xf32, #tpu.memory_space<vmem>>, vector<1x2x128xf32>
    %8 = vector.shape_cast %7 : vector<1x2x128xf32> to vector<2x128xf32>
    %9 = arith.addf %5, %8 : vector<2x128xf32>
    %10 = vector.extract_strided_slice %9 {offsets = [0, 0], sizes = [2, 32], strides = [1, 1]} : vector<2x128xf32> to vector<2x32xf32>
    %11 = arith.negf %10 : vector<2x32xf32>
    %12 = math.exp %11 : vector<2x32xf32>
    %cst_7 = arith.constant 1.000000e+00 : f32
    %13 = vector.broadcast %cst_7 : f32 to vector<2x32xf32>
    %14 = arith.addf %13, %12 : vector<2x32xf32>
    %15 = arith.divf %13, %14 : vector<2x32xf32>
    %16 = vector.extract_strided_slice %9 {offsets = [0, 32], sizes = [2, 32], strides = [1, 1]} : vector<2x128xf32> to vector<2x32xf32>
    %17 = arith.negf %16 : vector<2x32xf32>
    %18 = math.exp %17 : vector<2x32xf32>
    %cst_8 = arith.constant 1.000000e+00 : f32
    %19 = vector.broadcast %cst_8 : f32 to vector<2x32xf32>
    %20 = arith.addf %19, %18 : vector<2x32xf32>
    %21 = arith.divf %19, %20 : vector<2x32xf32>
    %22 = vector.extract_strided_slice %9 {offsets = [0, 64], sizes = [2, 32], strides = [1, 1]} : vector<2x128xf32> to vector<2x32xf32>
    %23 = math.tanh %22 : vector<2x32xf32>
    %24 = vector.extract_strided_slice %9 {offsets = [0, 96], sizes = [2, 32], strides = [1, 1]} : vector<2x128xf32> to vector<2x32xf32>
    %25 = arith.negf %24 : vector<2x32xf32>
    %26 = math.exp %25 : vector<2x32xf32>
    %cst_9 = arith.constant 1.000000e+00 : f32
    %27 = vector.broadcast %cst_9 : f32 to vector<2x32xf32>
    %28 = arith.addf %27, %26 : vector<2x32xf32>
    %29 = arith.divf %27, %28 : vector<2x32xf32>
    %c0_10 = arith.constant 0 : index
    %c0_11 = arith.constant 0 : index
    %30 = vector.load %arg9[%c0_10, %c0_11] : memref<2x32xf32, #tpu.memory_space<vmem>>, vector<2x32xf32>
    %31 = arith.mulf %21, %30 : vector<2x32xf32>
    %32 = arith.mulf %15, %23 : vector<2x32xf32>
    %33 = arith.addf %31, %32 : vector<2x32xf32>
    %34 = math.tanh %33 : vector<2x32xf32>
    %35 = arith.mulf %29, %34 : vector<2x32xf32>
    %c0_12 = arith.constant 0 : index
    %c0_13 = arith.constant 0 : index
    %36 = vector.load %arg9[%c0_12, %c0_13] : memref<2x32xf32, #tpu.memory_space<vmem>>, vector<2x32xf32>
    tpu.vector_store %arg9[%c0_12, %c0_13], %33 {strides = array<i32>} : memref<2x32xf32, #tpu.memory_space<vmem>>, vector<2x32xf32>,
    %c0_14 = arith.constant 0 : index
    %c0_15 = arith.constant 0 : index
    %37 = vector.load %arg8[%c0_14, %c0_15] : memref<2x32xf32, #tpu.memory_space<vmem>>, vector<2x32xf32>
    tpu.vector_store %arg8[%c0_14, %c0_15], %35 {strides = array<i32>} : memref<2x32xf32, #tpu.memory_space<vmem>>, vector<2x32xf32>,
    %38 = arith.index_cast %c0_i32_1 : i32 to index
    %c0_16 = arith.constant 0 : index
    %c0_17 = arith.constant 0 : index
    %39 = vector.load %arg5[%38, %c0_16, %c0_17] : memref<8x2x32xf32, #tpu.memory_space<vmem>>, vector<1x2x32xf32>
    %40 = vector.shape_cast %39 : vector<1x2x32xf32> to vector<2x32xf32>
    %41 = vector.shape_cast %35 : vector<2x32xf32> to vector<1x2x32xf32>
    tpu.vector_store %arg5[%38, %c0_16, %c0_17], %41 {strides = array<i32>} : memref<8x2x32xf32, #tpu.memory_space<vmem>>, vector<1x2x32xf32>,
    %c1_i32 = arith.constant 1 : i32
    %c0_18 = arith.constant 0 : index
    %c0_19 = arith.constant 0 : index
    %42 = vector.load %arg8[%c0_18, %c0_19] : memref<2x32xf32, #tpu.memory_space<vmem>>, vector<2x32xf32>
    %c0_20 = arith.constant 0 : index
    %c0_21 = arith.constant 0 : index
    %43 = vector.load %arg4[%c0_20, %c0_21] : memref<32x128xf32, #tpu.memory_space<vmem>>, vector<32x128xf32>
    %cst_22 = arith.constant dense<0.000000e+00> : vector<2x128xf32>
    %44 = tpu.matmul %42, %43, %cst_22 {dimension_numbers = #tpu.dot_dimension_numbers<[1], [0], [0], [1], [0, 0, 1, 1], [], []>} : vector<2x32xf32>, vector<32x128xf32>, vector<2x128xf32> -> vector<2x128xf32>
    %45 = arith.index_cast %c1_i32 : i32 to index
    %c0_23 = arith.constant 0 : index
    %c0_24 = arith.constant 0 : index
    %46 = vector.load %arg1[%45, %c0_23, %c0_24] : memref<8x2x128xf32, #tpu.memory_space<vmem>>, vector<1x2x128xf32>
    %47 = vector.shape_cast %46 : vector<1x2x128xf32> to vector<2x128xf32>
    %48 = arith.addf %44, %47 : vector<2x128xf32>
    %49 = vector.extract_strided_slice %48 {offsets = [0, 0], sizes = [2, 32], strides = [1, 1]} : vector<2x128xf32> to vector<2x32xf32>
    %50 = arith.negf %49 : vector<2x32xf32>
    %51 = math.exp %50 : vector<2x32xf32>
    %cst_25 = arith.constant 1.000000e+00 : f32
    %52 = vector.broadcast %cst_25 : f32 to vector<2x32xf32>
    %53 = arith.addf %52, %51 : vector<2x32xf32>
    %54 = arith.divf %52, %53 : vector<2x32xf32>
    %55 = vector.extract_strided_slice %48 {offsets = [0, 32], sizes = [2, 32], strides = [1, 1]} : vector<2x128xf32> to vector<2x32xf32>
    %56 = arith.negf %55 : vector<2x32xf32>
    %57 = math.exp %56 : vector<2x32xf32>
    %cst_26 = arith.constant 1.000000e+00 : f32
    %58 = vector.broadcast %cst_26 : f32 to vector<2x32xf32>
    %59 = arith.addf %58, %57 : vector<2x32xf32>
    %60 = arith.divf %58, %59 : vector<2x32xf32>
    %61 = vector.extract_strided_slice %48 {offsets = [0, 64], sizes = [2, 32], strides = [1, 1]} : vector<2x128xf32> to vector<2x32xf32>
    %62 = math.tanh %61 : vector<2x32xf32>
    %63 = vector.extract_strided_slice %48 {offsets = [0, 96], sizes = [2, 32], strides = [1, 1]} : vector<2x128xf32> to vector<2x32xf32>
    %64 = arith.negf %63 : vector<2x32xf32>
    %65 = math.exp %64 : vector<2x32xf32>
    %cst_27 = arith.constant 1.000000e+00 : f32
    %66 = vector.broadcast %cst_27 : f32 to vector<2x32xf32>
    %67 = arith.addf %66, %65 : vector<2x32xf32>
    %68 = arith.divf %66, %67 : vector<2x32xf32>
    %c0_28 = arith.constant 0 : index
    %c0_29 = arith.constant 0 : index
    %69 = vector.load %arg9[%c0_28, %c0_29] : memref<2x32xf32, #tpu.memory_space<vmem>>, vector<2x32xf32>
    %70 = arith.mulf %60, %69 : vector<2x32xf32>
    %71 = arith.mulf %54, %62 : vector<2x32xf32>
    %72 = arith.addf %70, %71 : vector<2x32xf32>
    %73 = math.tanh %72 : vector<2x32xf32>
    %74 = arith.mulf %68, %73 : vector<2x32xf32>
    %c0_30 = arith.constant 0 : index
    %c0_31 = arith.constant 0 : index
    %75 = vector.load %arg9[%c0_30, %c0_31] : memref<2x32xf32, #tpu.memory_space<vmem>>, vector<2x32xf32>
    tpu.vector_store %arg9[%c0_30, %c0_31], %72 {strides = array<i32>} : memref<2x32xf32, #tpu.memory_space<vmem>>, vector<2x32xf32>,
    %c0_32 = arith.constant 0 : index
    %c0_33 = arith.constant 0 : index
    %76 = vector.load %arg8[%c0_32, %c0_33] : memref<2x32xf32, #tpu.memory_space<vmem>>, vector<2x32xf32>
    tpu.vector_store %arg8[%c0_32, %c0_33], %74 {strides = array<i32>} : memref<2x32xf32, #tpu.memory_space<vmem>>, vector<2x32xf32>,
    %77 = arith.index_cast %c1_i32 : i32 to index
    %c0_34 = arith.constant 0 : index
    %c0_35 = arith.constant 0 : index
    %78 = vector.load %arg5[%77, %c0_34, %c0_35] : memref<8x2x32xf32, #tpu.memory_space<vmem>>, vector<1x2x32xf32>
    %79 = vector.shape_cast %78 : vector<1x2x32xf32> to vector<2x32xf32>
    %80 = vector.shape_cast %74 : vector<2x32xf32> to vector<1x2x32xf32>
    tpu.vector_store %arg5[%77, %c0_34, %c0_35], %80 {strides = array<i32>} : memref<8x2x32xf32, #tpu.memory_space<vmem>>, vector<1x2x32xf32>,
    %c2_i32 = arith.constant 2 : i32
    %c0_36 = arith.constant 0 : index
    %c0_37 = arith.constant 0 : index
    %81 = vector.load %arg8[%c0_36, %c0_37] : memref<2x32xf32, #tpu.memory_space<vmem>>, vector<2x32xf32>
    %c0_38 = arith.constant 0 : index
    %c0_39 = arith.constant 0 : index
    %82 = vector.load %arg4[%c0_38, %c0_39] : memref<32x128xf32, #tpu.memory_space<vmem>>, vector<32x128xf32>
    %cst_40 = arith.constant dense<0.000000e+00> : vector<2x128xf32>
    %83 = tpu.matmul %81, %82, %cst_40 {dimension_numbers = #tpu.dot_dimension_numbers<[1], [0], [0], [1], [0, 0, 1, 1], [], []>} : vector<2x32xf32>, vector<32x128xf32>, vector<2x128xf32> -> vector<2x128xf32>
    %84 = arith.index_cast %c2_i32 : i32 to index
    %c0_41 = arith.constant 0 : index
    %c0_42 = arith.constant 0 : index
    %85 = vector.load %arg1[%84, %c0_41, %c0_42] : memref<8x2x128xf32, #tpu.memory_space<vmem>>, vector<1x2x128xf32>
    %86 = vector.shape_cast %85 : vector<1x2x128xf32> to vector<2x128xf32>
    %87 = arith.addf %83, %86 : vector<2x128xf32>
    %88 = vector.extract_strided_slice %87 {offsets = [0, 0], sizes = [2, 32], strides = [1, 1]} : vector<2x128xf32> to vector<2x32xf32>
    %89 = arith.negf %88 : vector<2x32xf32>
    %90 = math.exp %89 : vector<2x32xf32>
    %cst_43 = arith.constant 1.000000e+00 : f32
    %91 = vector.broadcast %cst_43 : f32 to vector<2x32xf32>
    %92 = arith.addf %91, %90 : vector<2x32xf32>
    %93 = arith.divf %91, %92 : vector<2x32xf32>
    %94 = vector.extract_strided_slice %87 {offsets = [0, 32], sizes = [2, 32], strides = [1, 1]} : vector<2x128xf32> to vector<2x32xf32>
    %95 = arith.negf %94 : vector<2x32xf32>
    %96 = math.exp %95 : vector<2x32xf32>
    %cst_44 = arith.constant 1.000000e+00 : f32
    %97 = vector.broadcast %cst_44 : f32 to vector<2x32xf32>
    %98 = arith.addf %97, %96 : vector<2x32xf32>
    %99 = arith.divf %97, %98 : vector<2x32xf32>
    %100 = vector.extract_strided_slice %87 {offsets = [0, 64], sizes = [2, 32], strides = [1, 1]} : vector<2x128xf32> to vector<2x32xf32>
    %101 = math.tanh %100 : vector<2x32xf32>
    %102 = vector.extract_strided_slice %87 {offsets = [0, 96], sizes = [2, 32], strides = [1, 1]} : vector<2x128xf32> to vector<2x32xf32>
    %103 = arith.negf %102 : vector<2x32xf32>
    %104 = math.exp %103 : vector<2x32xf32>
    %cst_45 = arith.constant 1.000000e+00 : f32
    %105 = vector.broadcast %cst_45 : f32 to vector<2x32xf32>
    %106 = arith.addf %105, %104 : vector<2x32xf32>
    %107 = arith.divf %105, %106 : vector<2x32xf32>
    %c0_46 = arith.constant 0 : index
    %c0_47 = arith.constant 0 : index
    %108 = vector.load %arg9[%c0_46, %c0_47] : memref<2x32xf32, #tpu.memory_space<vmem>>, vector<2x32xf32>
    %109 = arith.mulf %99, %108 : vector<2x32xf32>
    %110 = arith.mulf %93, %101 : vector<2x32xf32>
    %111 = arith.addf %109, %110 : vector<2x32xf32>
    %112 = math.tanh %111 : vector<2x32xf32>
    %113 = arith.mulf %107, %112 : vector<2x32xf32>
    %c0_48 = arith.constant 0 : index
    %c0_49 = arith.constant 0 : index
    %114 = vector.load %arg9[%c0_48, %c0_49] : memref<2x32xf32, #tpu.memory_space<vmem>>, vector<2x32xf32>
    tpu.vector_store %arg9[%c0_48, %c0_49], %111 {strides = array<i32>} : memref<2x32xf32, #tpu.memory_space<vmem>>, vector<2x32xf32>,
    %c0_50 = arith.constant 0 : index
    %c0_51 = arith.constant 0 : index
    %115 = vector.load %arg8[%c0_50, %c0_51] : memref<2x32xf32, #tpu.memory_space<vmem>>, vector<2x32xf32>
    tpu.vector_store %arg8[%c0_50, %c0_51], %113 {strides = array<i32>} : memref<2x32xf32, #tpu.memory_space<vmem>>, vector<2x32xf32>,
    %116 = arith.index_cast %c2_i32 : i32 to index
    %c0_52 = arith.constant 0 : index
    %c0_53 = arith.constant 0 : index
    %117 = vector.load %arg5[%116, %c0_52, %c0_53] : memref<8x2x32xf32, #tpu.memory_space<vmem>>, vector<1x2x32xf32>
    %118 = vector.shape_cast %117 : vector<1x2x32xf32> to vector<2x32xf32>
    %119 = vector.shape_cast %113 : vector<2x32xf32> to vector<1x2x32xf32>
    tpu.vector_store %arg5[%116, %c0_52, %c0_53], %119 {strides = array<i32>} : memref<8x2x32xf32, #tpu.memory_space<vmem>>, vector<1x2x32xf32>,
    %c3_i32 = arith.constant 3 : i32
    %c0_54 = arith.constant 0 : index
    %c0_55 = arith.constant 0 : index
    %120 = vector.load %arg8[%c0_54, %c0_55] : memref<2x32xf32, #tpu.memory_space<vmem>>, vector<2x32xf32>
    %c0_56 = arith.constant 0 : index
    %c0_57 = arith.constant 0 : index
    %121 = vector.load %arg4[%c0_56, %c0_57] : memref<32x128xf32, #tpu.memory_space<vmem>>, vector<32x128xf32>
    %cst_58 = arith.constant dense<0.000000e+00> : vector<2x128xf32>
    %122 = tpu.matmul %120, %121, %cst_58 {dimension_numbers = #tpu.dot_dimension_numbers<[1], [0], [0], [1], [0, 0, 1, 1], [], []>} : vector<2x32xf32>, vector<32x128xf32>, vector<2x128xf32> -> vector<2x128xf32>
    %123 = arith.index_cast %c3_i32 : i32 to index
    %c0_59 = arith.constant 0 : index
    %c0_60 = arith.constant 0 : index
    %124 = vector.load %arg1[%123, %c0_59, %c0_60] : memref<8x2x128xf32, #tpu.memory_space<vmem>>, vector<1x2x128xf32>
    %125 = vector.shape_cast %124 : vector<1x2x128xf32> to vector<2x128xf32>
    %126 = arith.addf %122, %125 : vector<2x128xf32>
    %127 = vector.extract_strided_slice %126 {offsets = [0, 0], sizes = [2, 32], strides = [1, 1]} : vector<2x128xf32> to vector<2x32xf32>
    %128 = arith.negf %127 : vector<2x32xf32>
    %129 = math.exp %128 : vector<2x32xf32>
    %cst_61 = arith.constant 1.000000e+00 : f32
    %130 = vector.broadcast %cst_61 : f32 to vector<2x32xf32>
    %131 = arith.addf %130, %129 : vector<2x32xf32>
    %132 = arith.divf %130, %131 : vector<2x32xf32>
    %133 = vector.extract_strided_slice %126 {offsets = [0, 32], sizes = [2, 32], strides = [1, 1]} : vector<2x128xf32> to vector<2x32xf32>
    %134 = arith.negf %133 : vector<2x32xf32>
    %135 = math.exp %134 : vector<2x32xf32>
    %cst_62 = arith.constant 1.000000e+00 : f32
    %136 = vector.broadcast %cst_62 : f32 to vector<2x32xf32>
    %137 = arith.addf %136, %135 : vector<2x32xf32>
    %138 = arith.divf %136, %137 : vector<2x32xf32>
    %139 = vector.extract_strided_slice %126 {offsets = [0, 64], sizes = [2, 32], strides = [1, 1]} : vector<2x128xf32> to vector<2x32xf32>
    %140 = math.tanh %139 : vector<2x32xf32>
    %141 = vector.extract_strided_slice %126 {offsets = [0, 96], sizes = [2, 32], strides = [1, 1]} : vector<2x128xf32> to vector<2x32xf32>
    %142 = arith.negf %141 : vector<2x32xf32>
    %143 = math.exp %142 : vector<2x32xf32>
    %cst_63 = arith.constant 1.000000e+00 : f32
    %144 = vector.broadcast %cst_63 : f32 to vector<2x32xf32>
    %145 = arith.addf %144, %143 : vector<2x32xf32>
    %146 = arith.divf %144, %145 : vector<2x32xf32>
    %c0_64 = arith.constant 0 : index
    %c0_65 = arith.constant 0 : index
    %147 = vector.load %arg9[%c0_64, %c0_65] : memref<2x32xf32, #tpu.memory_space<vmem>>, vector<2x32xf32>
    %148 = arith.mulf %138, %147 : vector<2x32xf32>
    %149 = arith.mulf %132, %140 : vector<2x32xf32>
    %150 = arith.addf %148, %149 : vector<2x32xf32>
    %151 = math.tanh %150 : vector<2x32xf32>
    %152 = arith.mulf %146, %151 : vector<2x32xf32>
    %c0_66 = arith.constant 0 : index
    %c0_67 = arith.constant 0 : index
    %153 = vector.load %arg9[%c0_66, %c0_67] : memref<2x32xf32, #tpu.memory_space<vmem>>, vector<2x32xf32>
    tpu.vector_store %arg9[%c0_66, %c0_67], %150 {strides = array<i32>} : memref<2x32xf32, #tpu.memory_space<vmem>>, vector<2x32xf32>,
    %c0_68 = arith.constant 0 : index
    %c0_69 = arith.constant 0 : index
    %154 = vector.load %arg8[%c0_68, %c0_69] : memref<2x32xf32, #tpu.memory_space<vmem>>, vector<2x32xf32>
    tpu.vector_store %arg8[%c0_68, %c0_69], %152 {strides = array<i32>} : memref<2x32xf32, #tpu.memory_space<vmem>>, vector<2x32xf32>,
    %155 = arith.index_cast %c3_i32 : i32 to index
    %c0_70 = arith.constant 0 : index
    %c0_71 = arith.constant 0 : index
    %156 = vector.load %arg5[%155, %c0_70, %c0_71] : memref<8x2x32xf32, #tpu.memory_space<vmem>>, vector<1x2x32xf32>
    %157 = vector.shape_cast %156 : vector<1x2x32xf32> to vector<2x32xf32>
    %158 = vector.shape_cast %152 : vector<2x32xf32> to vector<1x2x32xf32>
    tpu.vector_store %arg5[%155, %c0_70, %c0_71], %158 {strides = array<i32>} : memref<8x2x32xf32, #tpu.memory_space<vmem>>, vector<1x2x32xf32>,
    %c4_i32 = arith.constant 4 : i32
    %c0_72 = arith.constant 0 : index
    %c0_73 = arith.constant 0 : index
    %159 = vector.load %arg8[%c0_72, %c0_73] : memref<2x32xf32, #tpu.memory_space<vmem>>, vector<2x32xf32>
    %c0_74 = arith.constant 0 : index
    %c0_75 = arith.constant 0 : index
    %160 = vector.load %arg4[%c0_74, %c0_75] : memref<32x128xf32, #tpu.memory_space<vmem>>, vector<32x128xf32>
    %cst_76 = arith.constant dense<0.000000e+00> : vector<2x128xf32>
    %161 = tpu.matmul %159, %160, %cst_76 {dimension_numbers = #tpu.dot_dimension_numbers<[1], [0], [0], [1], [0, 0, 1, 1], [], []>} : vector<2x32xf32>, vector<32x128xf32>, vector<2x128xf32> -> vector<2x128xf32>
    %162 = arith.index_cast %c4_i32 : i32 to index
    %c0_77 = arith.constant 0 : index
    %c0_78 = arith.constant 0 : index
    %163 = vector.load %arg1[%162, %c0_77, %c0_78] : memref<8x2x128xf32, #tpu.memory_space<vmem>>, vector<1x2x128xf32>
    %164 = vector.shape_cast %163 : vector<1x2x128xf32> to vector<2x128xf32>
    %165 = arith.addf %161, %164 : vector<2x128xf32>
    %166 = vector.extract_strided_slice %165 {offsets = [0, 0], sizes = [2, 32], strides = [1, 1]} : vector<2x128xf32> to vector<2x32xf32>
    %167 = arith.negf %166 : vector<2x32xf32>
    %168 = math.exp %167 : vector<2x32xf32>
    %cst_79 = arith.constant 1.000000e+00 : f32
    %169 = vector.broadcast %cst_79 : f32 to vector<2x32xf32>
    %170 = arith.addf %169, %168 : vector<2x32xf32>
    %171 = arith.divf %169, %170 : vector<2x32xf32>
    %172 = vector.extract_strided_slice %165 {offsets = [0, 32], sizes = [2, 32], strides = [1, 1]} : vector<2x128xf32> to vector<2x32xf32>
    %173 = arith.negf %172 : vector<2x32xf32>
    %174 = math.exp %173 : vector<2x32xf32>
    %cst_80 = arith.constant 1.000000e+00 : f32
    %175 = vector.broadcast %cst_80 : f32 to vector<2x32xf32>
    %176 = arith.addf %175, %174 : vector<2x32xf32>
    %177 = arith.divf %175, %176 : vector<2x32xf32>
    %178 = vector.extract_strided_slice %165 {offsets = [0, 64], sizes = [2, 32], strides = [1, 1]} : vector<2x128xf32> to vector<2x32xf32>
    %179 = math.tanh %178 : vector<2x32xf32>
    %180 = vector.extract_strided_slice %165 {offsets = [0, 96], sizes = [2, 32], strides = [1, 1]} : vector<2x128xf32> to vector<2x32xf32>
    %181 = arith.negf %180 : vector<2x32xf32>
    %182 = math.exp %181 : vector<2x32xf32>
    %cst_81 = arith.constant 1.000000e+00 : f32
    %183 = vector.broadcast %cst_81 : f32 to vector<2x32xf32>
    %184 = arith.addf %183, %182 : vector<2x32xf32>
    %185 = arith.divf %183, %184 : vector<2x32xf32>
    %c0_82 = arith.constant 0 : index
    %c0_83 = arith.constant 0 : index
    %186 = vector.load %arg9[%c0_82, %c0_83] : memref<2x32xf32, #tpu.memory_space<vmem>>, vector<2x32xf32>
    %187 = arith.mulf %177, %186 : vector<2x32xf32>
    %188 = arith.mulf %171, %179 : vector<2x32xf32>
    %189 = arith.addf %187, %188 : vector<2x32xf32>
    %190 = math.tanh %189 : vector<2x32xf32>
    %191 = arith.mulf %185, %190 : vector<2x32xf32>
    %c0_84 = arith.constant 0 : index
    %c0_85 = arith.constant 0 : index
    %192 = vector.load %arg9[%c0_84, %c0_85] : memref<2x32xf32, #tpu.memory_space<vmem>>, vector<2x32xf32>
    tpu.vector_store %arg9[%c0_84, %c0_85], %189 {strides = array<i32>} : memref<2x32xf32, #tpu.memory_space<vmem>>, vector<2x32xf32>,
    %c0_86 = arith.constant 0 : index
    %c0_87 = arith.constant 0 : index
    %193 = vector.load %arg8[%c0_86, %c0_87] : memref<2x32xf32, #tpu.memory_space<vmem>>, vector<2x32xf32>
    tpu.vector_store %arg8[%c0_86, %c0_87], %191 {strides = array<i32>} : memref<2x32xf32, #tpu.memory_space<vmem>>, vector<2x32xf32>,
    %194 = arith.index_cast %c4_i32 : i32 to index
    %c0_88 = arith.constant 0 : index
    %c0_89 = arith.constant 0 : index
    %195 = vector.load %arg5[%194, %c0_88, %c0_89] : memref<8x2x32xf32, #tpu.memory_space<vmem>>, vector<1x2x32xf32>
    %196 = vector.shape_cast %195 : vector<1x2x32xf32> to vector<2x32xf32>
    %197 = vector.shape_cast %191 : vector<2x32xf32> to vector<1x2x32xf32>
    tpu.vector_store %arg5[%194, %c0_88, %c0_89], %197 {strides = array<i32>} : memref<8x2x32xf32, #tpu.memory_space<vmem>>, vector<1x2x32xf32>,
    %c5_i32 = arith.constant 5 : i32
    %c0_90 = arith.constant 0 : index
    %c0_91 = arith.constant 0 : index
    %198 = vector.load %arg8[%c0_90, %c0_91] : memref<2x32xf32, #tpu.memory_space<vmem>>, vector<2x32xf32>
    %c0_92 = arith.constant 0 : index
    %c0_93 = arith.constant 0 : index
    %199 = vector.load %arg4[%c0_92, %c0_93] : memref<32x128xf32, #tpu.memory_space<vmem>>, vector<32x128xf32>
    %cst_94 = arith.constant dense<0.000000e+00> : vector<2x128xf32>
    %200 = tpu.matmul %198, %199, %cst_94 {dimension_numbers = #tpu.dot_dimension_numbers<[1], [0], [0], [1], [0, 0, 1, 1], [], []>} : vector<2x32xf32>, vector<32x128xf32>, vector<2x128xf32> -> vector<2x128xf32>
    %201 = arith.index_cast %c5_i32 : i32 to index
    %c0_95 = arith.constant 0 : index
    %c0_96 = arith.constant 0 : index
    %202 = vector.load %arg1[%201, %c0_95, %c0_96] : memref<8x2x128xf32, #tpu.memory_space<vmem>>, vector<1x2x128xf32>
    %203 = vector.shape_cast %202 : vector<1x2x128xf32> to vector<2x128xf32>
    %204 = arith.addf %200, %203 : vector<2x128xf32>
    %205 = vector.extract_strided_slice %204 {offsets = [0, 0], sizes = [2, 32], strides = [1, 1]} : vector<2x128xf32> to vector<2x32xf32>
    %206 = arith.negf %205 : vector<2x32xf32>
    %207 = math.exp %206 : vector<2x32xf32>
    %cst_97 = arith.constant 1.000000e+00 : f32
    %208 = vector.broadcast %cst_97 : f32 to vector<2x32xf32>
    %209 = arith.addf %208, %207 : vector<2x32xf32>
    %210 = arith.divf %208, %209 : vector<2x32xf32>
    %211 = vector.extract_strided_slice %204 {offsets = [0, 32], sizes = [2, 32], strides = [1, 1]} : vector<2x128xf32> to vector<2x32xf32>
    %212 = arith.negf %211 : vector<2x32xf32>
    %213 = math.exp %212 : vector<2x32xf32>
    %cst_98 = arith.constant 1.000000e+00 : f32
    %214 = vector.broadcast %cst_98 : f32 to vector<2x32xf32>
    %215 = arith.addf %214, %213 : vector<2x32xf32>
    %216 = arith.divf %214, %215 : vector<2x32xf32>
    %217 = vector.extract_strided_slice %204 {offsets = [0, 64], sizes = [2, 32], strides = [1, 1]} : vector<2x128xf32> to vector<2x32xf32>
    %218 = math.tanh %217 : vector<2x32xf32>
    %219 = vector.extract_strided_slice %204 {offsets = [0, 96], sizes = [2, 32], strides = [1, 1]} : vector<2x128xf32> to vector<2x32xf32>
    %220 = arith.negf %219 : vector<2x32xf32>
    %221 = math.exp %220 : vector<2x32xf32>
    %cst_99 = arith.constant 1.000000e+00 : f32
    %222 = vector.broadcast %cst_99 : f32 to vector<2x32xf32>
    %223 = arith.addf %222, %221 : vector<2x32xf32>
    %224 = arith.divf %222, %223 : vector<2x32xf32>
    %c0_100 = arith.constant 0 : index
    %c0_101 = arith.constant 0 : index
    %225 = vector.load %arg9[%c0_100, %c0_101] : memref<2x32xf32, #tpu.memory_space<vmem>>, vector<2x32xf32>
    %226 = arith.mulf %216, %225 : vector<2x32xf32>
    %227 = arith.mulf %210, %218 : vector<2x32xf32>
    %228 = arith.addf %226, %227 : vector<2x32xf32>
    %229 = math.tanh %228 : vector<2x32xf32>
    %230 = arith.mulf %224, %229 : vector<2x32xf32>
    %c0_102 = arith.constant 0 : index
    %c0_103 = arith.constant 0 : index
    %231 = vector.load %arg9[%c0_102, %c0_103] : memref<2x32xf32, #tpu.memory_space<vmem>>, vector<2x32xf32>
    tpu.vector_store %arg9[%c0_102, %c0_103], %228 {strides = array<i32>} : memref<2x32xf32, #tpu.memory_space<vmem>>, vector<2x32xf32>,
    %c0_104 = arith.constant 0 : index
    %c0_105 = arith.constant 0 : index
    %232 = vector.load %arg8[%c0_104, %c0_105] : memref<2x32xf32, #tpu.memory_space<vmem>>, vector<2x32xf32>
    tpu.vector_store %arg8[%c0_104, %c0_105], %230 {strides = array<i32>} : memref<2x32xf32, #tpu.memory_space<vmem>>, vector<2x32xf32>,
    %233 = arith.index_cast %c5_i32 : i32 to index
    %c0_106 = arith.constant 0 : index
    %c0_107 = arith.constant 0 : index
    %234 = vector.load %arg5[%233, %c0_106, %c0_107] : memref<8x2x32xf32, #tpu.memory_space<vmem>>, vector<1x2x32xf32>
    %235 = vector.shape_cast %234 : vector<1x2x32xf32> to vector<2x32xf32>
    %236 = vector.shape_cast %230 : vector<2x32xf32> to vector<1x2x32xf32>
    tpu.vector_store %arg5[%233, %c0_106, %c0_107], %236 {strides = array<i32>} : memref<8x2x32xf32, #tpu.memory_space<vmem>>, vector<1x2x32xf32>,
    %c6_i32 = arith.constant 6 : i32
    %c0_108 = arith.constant 0 : index
    %c0_109 = arith.constant 0 : index
    %237 = vector.load %arg8[%c0_108, %c0_109] : memref<2x32xf32, #tpu.memory_space<vmem>>, vector<2x32xf32>
    %c0_110 = arith.constant 0 : index
    %c0_111 = arith.constant 0 : index
    %238 = vector.load %arg4[%c0_110, %c0_111] : memref<32x128xf32, #tpu.memory_space<vmem>>, vector<32x128xf32>
    %cst_112 = arith.constant dense<0.000000e+00> : vector<2x128xf32>
    %239 = tpu.matmul %237, %238, %cst_112 {dimension_numbers = #tpu.dot_dimension_numbers<[1], [0], [0], [1], [0, 0, 1, 1], [], []>} : vector<2x32xf32>, vector<32x128xf32>, vector<2x128xf32> -> vector<2x128xf32>
    %240 = arith.index_cast %c6_i32 : i32 to index
    %c0_113 = arith.constant 0 : index
    %c0_114 = arith.constant 0 : index
    %241 = vector.load %arg1[%240, %c0_113, %c0_114] : memref<8x2x128xf32, #tpu.memory_space<vmem>>, vector<1x2x128xf32>
    %242 = vector.shape_cast %241 : vector<1x2x128xf32> to vector<2x128xf32>
    %243 = arith.addf %239, %242 : vector<2x128xf32>
    %244 = vector.extract_strided_slice %243 {offsets = [0, 0], sizes = [2, 32], strides = [1, 1]} : vector<2x128xf32> to vector<2x32xf32>
    %245 = arith.negf %244 : vector<2x32xf32>
    %246 = math.exp %245 : vector<2x32xf32>
    %cst_115 = arith.constant 1.000000e+00 : f32
    %247 = vector.broadcast %cst_115 : f32 to vector<2x32xf32>
    %248 = arith.addf %247, %246 : vector<2x32xf32>
    %249 = arith.divf %247, %248 : vector<2x32xf32>
    %250 = vector.extract_strided_slice %243 {offsets = [0, 32], sizes = [2, 32], strides = [1, 1]} : vector<2x128xf32> to vector<2x32xf32>
    %251 = arith.negf %250 : vector<2x32xf32>
    %252 = math.exp %251 : vector<2x32xf32>
    %cst_116 = arith.constant 1.000000e+00 : f32
    %253 = vector.broadcast %cst_116 : f32 to vector<2x32xf32>
    %254 = arith.addf %253, %252 : vector<2x32xf32>
    %255 = arith.divf %253, %254 : vector<2x32xf32>
    %256 = vector.extract_strided_slice %243 {offsets = [0, 64], sizes = [2, 32], strides = [1, 1]} : vector<2x128xf32> to vector<2x32xf32>
    %257 = math.tanh %256 : vector<2x32xf32>
    %258 = vector.extract_strided_slice %243 {offsets = [0, 96], sizes = [2, 32], strides = [1, 1]} : vector<2x128xf32> to vector<2x32xf32>
    %259 = arith.negf %258 : vector<2x32xf32>
    %260 = math.exp %259 : vector<2x32xf32>
    %cst_117 = arith.constant 1.000000e+00 : f32
    %261 = vector.broadcast %cst_117 : f32 to vector<2x32xf32>
    %262 = arith.addf %261, %260 : vector<2x32xf32>
    %263 = arith.divf %261, %262 : vector<2x32xf32>
    %c0_118 = arith.constant 0 : index
    %c0_119 = arith.constant 0 : index
    %264 = vector.load %arg9[%c0_118, %c0_119] : memref<2x32xf32, #tpu.memory_space<vmem>>, vector<2x32xf32>
    %265 = arith.mulf %255, %264 : vector<2x32xf32>
    %266 = arith.mulf %249, %257 : vector<2x32xf32>
    %267 = arith.addf %265, %266 : vector<2x32xf32>
    %268 = math.tanh %267 : vector<2x32xf32>
    %269 = arith.mulf %263, %268 : vector<2x32xf32>
    %c0_120 = arith.constant 0 : index
    %c0_121 = arith.constant 0 : index
    %270 = vector.load %arg9[%c0_120, %c0_121] : memref<2x32xf32, #tpu.memory_space<vmem>>, vector<2x32xf32>
    tpu.vector_store %arg9[%c0_120, %c0_121], %267 {strides = array<i32>} : memref<2x32xf32, #tpu.memory_space<vmem>>, vector<2x32xf32>,
    %c0_122 = arith.constant 0 : index
    %c0_123 = arith.constant 0 : index
    %271 = vector.load %arg8[%c0_122, %c0_123] : memref<2x32xf32, #tpu.memory_space<vmem>>, vector<2x32xf32>
    tpu.vector_store %arg8[%c0_122, %c0_123], %269 {strides = array<i32>} : memref<2x32xf32, #tpu.memory_space<vmem>>, vector<2x32xf32>,
    %272 = arith.index_cast %c6_i32 : i32 to index
    %c0_124 = arith.constant 0 : index
    %c0_125 = arith.constant 0 : index
    %273 = vector.load %arg5[%272, %c0_124, %c0_125] : memref<8x2x32xf32, #tpu.memory_space<vmem>>, vector<1x2x32xf32>
    %274 = vector.shape_cast %273 : vector<1x2x32xf32> to vector<2x32xf32>
    %275 = vector.shape_cast %269 : vector<2x32xf32> to vector<1x2x32xf32>
    tpu.vector_store %arg5[%272, %c0_124, %c0_125], %275 {strides = array<i32>} : memref<8x2x32xf32, #tpu.memory_space<vmem>>, vector<1x2x32xf32>,
    %c7_i32 = arith.constant 7 : i32
    %c0_126 = arith.constant 0 : index
    %c0_127 = arith.constant 0 : index
    %276 = vector.load %arg8[%c0_126, %c0_127] : memref<2x32xf32, #tpu.memory_space<vmem>>, vector<2x32xf32>
    %c0_128 = arith.constant 0 : index
    %c0_129 = arith.constant 0 : index
    %277 = vector.load %arg4[%c0_128, %c0_129] : memref<32x128xf32, #tpu.memory_space<vmem>>, vector<32x128xf32>
    %cst_130 = arith.constant dense<0.000000e+00> : vector<2x128xf32>
    %278 = tpu.matmul %276, %277, %cst_130 {dimension_numbers = #tpu.dot_dimension_numbers<[1], [0], [0], [1], [0, 0, 1, 1], [], []>} : vector<2x32xf32>, vector<32x128xf32>, vector<2x128xf32> -> vector<2x128xf32>
    %279 = arith.index_cast %c7_i32 : i32 to index
    %c0_131 = arith.constant 0 : index
    %c0_132 = arith.constant 0 : index
    %280 = vector.load %arg1[%279, %c0_131, %c0_132] : memref<8x2x128xf32, #tpu.memory_space<vmem>>, vector<1x2x128xf32>
    %281 = vector.shape_cast %280 : vector<1x2x128xf32> to vector<2x128xf32>
    %282 = arith.addf %278, %281 : vector<2x128xf32>
    %283 = vector.extract_strided_slice %282 {offsets = [0, 0], sizes = [2, 32], strides = [1, 1]} : vector<2x128xf32> to vector<2x32xf32>
    %284 = arith.negf %283 : vector<2x32xf32>
    %285 = math.exp %284 : vector<2x32xf32>
    %cst_133 = arith.constant 1.000000e+00 : f32
    %286 = vector.broadcast %cst_133 : f32 to vector<2x32xf32>
    %287 = arith.addf %286, %285 : vector<2x32xf32>
    %288 = arith.divf %286, %287 : vector<2x32xf32>
    %289 = vector.extract_strided_slice %282 {offsets = [0, 32], sizes = [2, 32], strides = [1, 1]} : vector<2x128xf32> to vector<2x32xf32>
    %290 = arith.negf %289 : vector<2x32xf32>
    %291 = math.exp %290 : vector<2x32xf32>
    %cst_134 = arith.constant 1.000000e+00 : f32
    %292 = vector.broadcast %cst_134 : f32 to vector<2x32xf32>
    %293 = arith.addf %292, %291 : vector<2x32xf32>
    %294 = arith.divf %292, %293 : vector<2x32xf32>
    %295 = vector.extract_strided_slice %282 {offsets = [0, 64], sizes = [2, 32], strides = [1, 1]} : vector<2x128xf32> to vector<2x32xf32>
    %296 = math.tanh %295 : vector<2x32xf32>
    %297 = vector.extract_strided_slice %282 {offsets = [0, 96], sizes = [2, 32], strides = [1, 1]} : vector<2x128xf32> to vector<2x32xf32>
    %298 = arith.negf %297 : vector<2x32xf32>
    %299 = math.exp %298 : vector<2x32xf32>
    %cst_135 = arith.constant 1.000000e+00 : f32
    %300 = vector.broadcast %cst_135 : f32 to vector<2x32xf32>
    %301 = arith.addf %300, %299 : vector<2x32xf32>
    %302 = arith.divf %300, %301 : vector<2x32xf32>
    %c0_136 = arith.constant 0 : index
    %c0_137 = arith.constant 0 : index
    %303 = vector.load %arg9[%c0_136, %c0_137] : memref<2x32xf32, #tpu.memory_space<vmem>>, vector<2x32xf32>
    %304 = arith.mulf %294, %303 : vector<2x32xf32>
    %305 = arith.mulf %288, %296 : vector<2x32xf32>
    %306 = arith.addf %304, %305 : vector<2x32xf32>
    %307 = math.tanh %306 : vector<2x32xf32>
    %308 = arith.mulf %302, %307 : vector<2x32xf32>
    %c0_138 = arith.constant 0 : index
    %c0_139 = arith.constant 0 : index
    %309 = vector.load %arg9[%c0_138, %c0_139] : memref<2x32xf32, #tpu.memory_space<vmem>>, vector<2x32xf32>
    tpu.vector_store %arg9[%c0_138, %c0_139], %306 {strides = array<i32>} : memref<2x32xf32, #tpu.memory_space<vmem>>, vector<2x32xf32>,
    %c0_140 = arith.constant 0 : index
    %c0_141 = arith.constant 0 : index
    %310 = vector.load %arg8[%c0_140, %c0_141] : memref<2x32xf32, #tpu.memory_space<vmem>>, vector<2x32xf32>
    tpu.vector_store %arg8[%c0_140, %c0_141], %308 {strides = array<i32>} : memref<2x32xf32, #tpu.memory_space<vmem>>, vector<2x32xf32>,
    %311 = arith.index_cast %c7_i32 : i32 to index
    %c0_142 = arith.constant 0 : index
    %c0_143 = arith.constant 0 : index
    %312 = vector.load %arg5[%311, %c0_142, %c0_143] : memref<8x2x32xf32, #tpu.memory_space<vmem>>, vector<1x2x32xf32>
    %313 = vector.shape_cast %312 : vector<1x2x32xf32> to vector<2x32xf32>
    %314 = vector.shape_cast %308 : vector<2x32xf32> to vector<1x2x32xf32>
    tpu.vector_store %arg5[%311, %c0_142, %c0_143], %314 {strides = array<i32>} : memref<8x2x32xf32, #tpu.memory_space<vmem>>, vector<1x2x32xf32>,
    %c8_i32 = arith.constant 8 : i32
    %c0_i32_144 = arith.constant 0 : i32
    %315 = arith.cmpi eq, %arg0, %c0_i32_144 : i32
    %316 = arith.extui %315 : i1 to i32
    %c0_i32_145 = arith.constant 0 : i32
    %317 = arith.cmpi ne, %316, %c0_i32_145 : i32
    scf.if %317 {
      %c0_146 = arith.constant 0 : index
      %c0_147 = arith.constant 0 : index
      %318 = vector.load %arg8[%c0_146, %c0_147] : memref<2x32xf32, #tpu.memory_space<vmem>>, vector<2x32xf32>
      %c0_148 = arith.constant 0 : index
      %c0_149 = arith.constant 0 : index
      %319 = vector.load %arg6[%c0_148, %c0_149] : memref<2x32xf32, #tpu.memory_space<vmem>>, vector<2x32xf32>
      tpu.vector_store %arg6[%c0_148, %c0_149], %318 {strides = array<i32>} : memref<2x32xf32, #tpu.memory_space<vmem>>, vector<2x32xf32>,
      %c0_150 = arith.constant 0 : index
      %c0_151 = arith.constant 0 : index
      %320 = vector.load %arg9[%c0_150, %c0_151] : memref<2x32xf32, #tpu.memory_space<vmem>>, vector<2x32xf32>
      %c0_152 = arith.constant 0 : index
      %c0_153 = arith.constant 0 : index
      %321 = vector.load %arg7[%c0_152, %c0_153] : memref<2x32xf32, #tpu.memory_space<vmem>>, vector<2x32xf32>
      tpu.vector_store %arg7[%c0_152, %c0_153], %320 {strides = array<i32>} : memref<2x32xf32, #tpu.memory_space<vmem>>, vector<2x32xf32>,
    } else {
    }
    return
  }
  func.func @transform_0(%arg0: i32) -> (i32, i32, i32) {
    %c0_i32 = arith.constant 0 : i32
    %c0_i32_0 = arith.constant 0 : i32
    %c0_i32_1 = arith.constant 0 : i32
    return %arg0, %c0_i32, %c0_i32_0 : i32, i32, i32
  }
  func.func @transform_1(%arg0: i32) -> (i32, i32) {
    %c0_i32 = arith.constant 0 : i32
    %c0_i32_0 = arith.constant 0 : i32
    %c0_i32_1 = arith.constant 0 : i32
    return %c0_i32, %c0_i32_0 : i32, i32
  }
  func.func @transform_2(%arg0: i32) -> (i32, i32) {
    %c0_i32 = arith.constant 0 : i32
    %c0_i32_0 = arith.constant 0 : i32
    %c0_i32_1 = arith.constant 0 : i32
    return %c0_i32, %c0_i32_0 : i32, i32
  }
  func.func @transform_3(%arg0: i32) -> (i32, i32) {
    %c0_i32 = arith.constant 0 : i32
    %c0_i32_0 = arith.constant 0 : i32
    %c0_i32_1 = arith.constant 0 : i32
    return %c0_i32, %c0_i32_0 : i32, i32
  }
  func.func @transform_4(%arg0: i32) -> (i32, i32, i32) {
    %c0_i32 = arith.constant 0 : i32
    %c0_i32_0 = arith.constant 0 : i32
    %c0_i32_1 = arith.constant 0 : i32
    return %arg0, %c0_i32, %c0_i32_0 : i32, i32, i32
  }
  func.func @transform_5(%arg0: i32) -> (i32, i32) {
    %c0_i32 = arith.constant 0 : i32
    %c0_i32_0 = arith.constant 0 : i32
    %c0_i32_1 = arith.constant 0 : i32
    return %c0_i32, %c0_i32_0 : i32, i32
  }
  func.func @transform_6(%arg0: i32) -> (i32, i32) {
    %c0_i32 = arith.constant 0 : i32
    %c0_i32_0 = arith.constant 0 : i32
    %c0_i32_1 = arith.constant 0 : i32
    return %c0_i32, %c0_i32_0 : i32, i32
  }
}

</mosaic_0001>

<bundles_post_ra>
// kernel: poem_forward.9
= control target key start
LH: loop header
LB: loop body
LE: loop exit
PB: predicated region body
PF: predicated region fallthrough
CT: control target
= control target key end

     0   :  { %vm28_vm0 = vcmask 261120   ;;  %s220_s0 = inlined_call_operand.vmem [shape: f32[16,32], index: 0, kind: input, shape index: {}]   ;;  %s221_s1 = inlined_call_operand.vmem [shape: f32[32,128], index: 1, kind: input, shape index: {}]   ;;  %s222_s2 = inlined_call_operand.vmem [shape: f32[1,128], index: 2, kind: input, shape index: {}]   ;;  %s223_s3 = inlined_call_operand.hbm [shape: f32[16,128], index: 3, kind: output, shape index: {}]  }
   0x1   :  { %v20_v0 = vld [vmem:[%s221_s1 + $0x18] sm:$0xff]  ;;  %v19_v1 = vld [vmem:[%s221_s1 + $0x10] sm:$0xff]  ;;  %v15_v2 = vld [vmem:[%s220_s0] sm:$0xff] }
   0x2   :  { %137 = vmatprep.subr.mxu0 %v20_v0  ;;  %v18_v3 = vld [vmem:[%s221_s1 + $0x8] sm:$0xff]  ;;  %145 = vmatprep.mubr.msk.f32.mxu0 %vm28_vm0, %v15_v2 }
   0x3   :  { %138 = vmatpush3.msra.mxu0 %v20_v0 }
   0x4   :  { %8 = vsyncpa [#allocation3], 0  ;;  %139 = vmatprep.subr.mxu0 %v19_v1  ;;  %v17_v4 = vld [vmem:[%s221_s1] sm:$0xff]  ;;  %v16_v5 = vld [vmem:[%s220_s0 + $0x8] sm:$0xff]  ;;  %s173_s26 = smov [#allocation2]  }
   0x5   :  { %140 = vmatpush3.msra.mxu0 %v19_v1  ;;  %v128_v6 = vld [vmem:[%s222_s2] ss:$0 sm:$0xff]  ;;  %s117_s27 = sshll.u32 %s173_s26, 4  ;;  %s118_s27 = int_to_ptr.vmem [resolvable:$true] %s117_s27 }
   0x6   :  { %141 = vmatprep.subr.mxu0 %v18_v3  ;;  %s151_s1 = scalar_lea.vmem %s118_s27, 256  ;;  %p156_p1 = scmp.lt.s32.totalorder %s118_s27, %s118_s27 }
   0x7   :  { %142 = vmatpush3.msra.mxu0 %v18_v3  ;;  %p152_p0 = scmp.ne.s32.totalorder %s118_s27, %s151_s1  ;;  %p157_p2 = scmp.lt.s32.totalorder %s151_s1, %s151_s1 }
   0x8   :  { %143 = vmatprep.subr.mxu0 %v17_v4 }
   0x9   :  { %144 = vmatpush3.msra.mxu0 %v17_v4  ;;  %p158_p3 = por %p157_p2, %p156_p1 }
   0xa   :  { %146 = vmatmul.mubr.msk.f32.vlgmr.msra.gmra.mxu0 %vm28_vm0, %v16_v5 }
   0xb   :  { %p159_p4 = pnand %p158_p3, %p152_p0 }
  0xca   :  { %v147_v7 = vpop.f32.mrf.mxu0 }
  0xcb   :  { %v107_v8 = vadd.f32 %v147_v7, %v128_v6 }
  0xcc   :  { %v101_v9 = vpop.f32.mrf.mxu0 }
  0xcd   :  { %111 = vst [vmem:[#allocation2 + $0x8] sm:$0xff] %v107_v8  ;;  %v102_v10 = vadd.f32 %v128_v6, %v101_v9 }
  0xcf   :  { %110 = vst [vmem:[#allocation2] sm:$0xff] %v102_v10 }
  0xd0   :  { %162 = shalt.err (!%p159_p4)
}
  0xd1   :  { %s174_s0 = smov 128   ;;  %s175_s28 = smov 8  }
  0xd2   :  { %123 = dma.vmem_to_hbm [thread:$0]  %s118_s27, 256, %s223_s3, [#allocation3], %s174_s0, %s174_s0, %s175_s28  }
  0xd3   :  { %171 = dma.done.wait [#allocation3], 256  }
  0xd4   :  { %172 = vsyncadd [#allocation3], 4294967040 }
  0xd5   :  { %127 = vsyncpa [#allocation3], 1 }

// kernel: poem_forward.5
= control target key start
LH: loop header
LB: loop body
LE: loop exit
PB: predicated region body
PF: predicated region fallthrough
CT: control target
= control target key end

     0   :  { %vm27_vm0 = vcmask 261120   ;;  %s184_s1 = inlined_call_operand.vmem [shape: f32[32,128], index: 1, kind: input, shape index: {}]   ;;  %s185_s0 = inlined_call_operand.vmem [shape: f32[16,32], index: 0, kind: input, shape index: {}]   ;;  %s186_s2 = inlined_call_operand.vmem [shape: f32[1,128], index: 2, kind: input, shape index: {}]   ;;  %s187_s3 = inlined_call_operand.vmem [shape: f32[16,128], index: 3, kind: output, shape index: {}]  }
   0x1   :  { %v19_v0 = vld [vmem:[%s184_s1 + $0x18] sm:$0xff]  ;;  %v18_v1 = vld [vmem:[%s184_s1 + $0x10] sm:$0xff]  ;;  %v14_v2 = vld [vmem:[%s185_s0] sm:$0xff] }
   0x2   :  { %124 = vmatprep.subr.mxu0 %v19_v0  ;;  %v17_v3 = vld [vmem:[%s184_s1 + $0x8] sm:$0xff]  ;;  %132 = vmatprep.mubr.msk.f32.mxu0 %vm27_vm0, %v14_v2  ;;  %v16_v4 = vld [vmem:[%s184_s1] sm:$0xff] }
   0x3   :  { %125 = vmatpush3.msra.mxu0 %v19_v0  ;;  %v15_v5 = vld [vmem:[%s185_s0 + $0x8] sm:$0xff]  ;;  %v115_v6 = vld [vmem:[%s186_s2] ss:$0 sm:$0xff] }
   0x4   :  { %126 = vmatprep.subr.mxu0 %v18_v1 }
   0x5   :  { %127 = vmatpush3.msra.mxu0 %v18_v1 }
   0x6   :  { %128 = vmatprep.subr.mxu0 %v17_v3 }
   0x7   :  { %129 = vmatpush3.msra.mxu0 %v17_v3 }
   0x8   :  { %130 = vmatprep.subr.mxu0 %v16_v4 }
   0x9   :  { %131 = vmatpush3.msra.mxu0 %v16_v4 }
   0xa   :  { %133 = vmatmul.mubr.msk.f32.vlgmr.msra.gmra.mxu0 %vm27_vm0, %v15_v5 }
  0xca   :  { %v134_v7 = vpop.f32.mrf.mxu0 }
  0xcb   :  { %v106_v8 = vadd.f32 %v134_v7, %v115_v6 }
  0xcc   :  { %v100_v9 = vpop.f32.mrf.mxu0 }
  0xcd   :  { %110 = vst [vmem:[%s187_s3 + $0x8] sm:$0xff] %v106_v8  ;;  %v101_v10 = vadd.f32 %v115_v6, %v100_v9 }
  0xcf   :  { %109 = vst [vmem:[%s187_s3] sm:$0xff] %v101_v10 }

// kernel: poem_forward.6
= control target key start
LH: loop header
LB: loop body
LE: loop exit
PB: predicated region body
PF: predicated region fallthrough
CT: control target
= control target key end

     0   :  { %vm25_vm0 = vcmask 254976   ;;  %v1243_v0 = vmov 0.0   ;;  %vm1244_vm1 = vmmov 0   ;;  %vm35_vm2 = vcmask 261120   ;;  %s1245_s9 = smov 64   ;;  %s1246_s10 = smov 32   ;;  %s1527_s3 = inlined_call_operand.vmem [shape: f32[32,128], index: 3, kind: input, shape index: {}]   ;;  %s1528_s1 = inlined_call_operand.vmem [shape: f32[2,32], index: 1, kind: input, shape index: {}, may-alias: {1,2}]   ;;  %s1529_s2 = inlined_call_operand.vmem [shape: f32[2,32], index: 2, kind: input, shape index: {}, may-alias: {1,2}]   ;;  %s1530_s0 = inlined_call_operand.vmem [shape: f32[8,2,128], index: 0, kind: input, shape index: {}]   ;;  %s1531_s4 = inlined_call_operand.vmem [shape: f32[8,2,32], index: 4, kind: output, shape index: {0}]   ;;  %s1532_s6 = inlined_call_operand.vmem [shape: f32[2,32], index: 6, kind: output, shape index: {2}]   ;;  %s1533_s5 = inlined_call_operand.vmem [shape: f32[2,32], index: 5, kind: output, shape index: {1}]  }
   0x1   :  { %1086 = vmatprep.subr.mxu0 %v1243_v0  ;;  %v1287_v1 = vld [vmem:[%s1527_s3 + $0x18] sm:$0xff]  ;;  %v1292_v2 = vld [vmem:[%s1527_s3 + $0x10] sm:$0xff]  ;;  %1094 = vmatprep.mubr.msk.f32.mxu0 %vm1244_vm1, %v1243_v0  ;;  %v24_v3 = vld [vmem:[%s1528_s1] sm:$0x3] }
   0x2   :  { %1087 = vmatpush3.msra.mxu0 %v1287_v1  ;;  %1097 = vmatprep.subr.mxu1 %v1243_v0  ;;  %v1305_v4 = vld [vmem:[%s1527_s3 + $0x8] sm:$0xff]  ;;  %26 = vst.msk [vmem:[#allocation2] sm:$0x3] %vm25_vm0, %v24_v3  ;;  %v1315_v5 = vld [vmem:[%s1527_s3] sm:$0xff] }
   0x3   :  { %1088 = vmatprep.subr.mxu0 %v1243_v0  ;;  %1098 = vmatpush3.msra.mxu1 %v1287_v1  ;;  %v27_v7 = vld [vmem:[%s1529_s2] sm:$0x3]  ;;  %s1247_s2 = smov 96   ;;  %v1018_v31 = vld [vmem:[%s1530_s0 + $0x2] sm:$0x3] }
   0x4   :  { %1089 = vmatpush3.msra.mxu0 %v1292_v2  ;;  %1099 = vmatprep.subr.mxu1 %v1243_v0  ;;  %28 = vst.msk [vmem:[#allocation3] sm:$0x3] %vm25_vm0, %v27_v7  ;;  %v34_v8 = vld [vmem:[%s1530_s0] sm:$0x3]  ;;  %v1022_v53 = vld [vmem:[%s1530_s0 + $0x4] sm:$0x3] }
   0x5   :  { %1090 = vmatprep.subr.mxu0 %v1243_v0  ;;  %1100 = vmatpush3.msra.mxu1 %v1292_v2 }
   0x6   :  { %1091 = vmatpush3.msra.mxu0 %v1305_v4  ;;  %1101 = vmatprep.subr.mxu1 %v1243_v0 }
   0x7   :  { %1092 = vmatprep.subr.mxu0 %v1243_v0  ;;  %1102 = vmatpush3.msra.mxu1 %v1305_v4 }
   0x8   :  { %1093 = vmatpush3.msra.mxu0 %v1315_v5  ;;  %1103 = vmatprep.subr.mxu1 %v1243_v0 }
   0x9   :  { %1104 = vmatpush3.msra.mxu1 %v1315_v5  ;;  %1105 = vmatprep.mubr.msk.f32.mxu1 %vm1244_vm1, %v1243_v0  ;;  %v29_v6 = vld [vmem:[#allocation2] sm:$0x3] }
   0xa   :  { %1108 = vmatprep.subr.mxu0 %v1243_v0  ;;  %1119 = vmatprep.subr.mxu1 %v1243_v0 }
   0xb   :  { %1095 = vmatmul.mubr.msk.f32.vlgmr.msra.gmra.mxu0 %vm35_vm2, %v29_v6  ;;  %v116_v13 = vld [vmem:[#allocation3] sm:$0x3] }
   0xc   :  { %1109 = vmatpush3.msra.mxu0 %v1287_v1  ;;  %1116 = vmatprep.mubr.msk.f32.mxu0 %vm1244_vm1, %v1243_v0 }
   0xd   :  { %1110 = vmatprep.subr.mxu0 %v1243_v0 }
   0xe   :  { %1111 = vmatpush3.msra.mxu0 %v1292_v2 }
   0xf   :  { %1112 = vmatprep.subr.mxu0 %v1243_v0 }
  0x10   :  { %1113 = vmatpush3.msra.mxu0 %v1305_v4 }
  0x11   :  { %1114 = vmatprep.subr.mxu0 %v1243_v0 }
  0x12   :  { %1115 = vmatpush3.msra.mxu0 %v1315_v5 }
  0x13   :  { %1130 = vmatprep.subr.mxu0 %v1243_v0 }
  0xcb   :  { %v105_v9 = vpop.f32.mrf.mxu0 }
  0xcc   :  { %v106_v10 = vadd.f32 %v105_v9, %v34_v8 }
  0xcd   :  { %v1096_v11 = vpop.f32.mrf.mxu0 }
  0xce   :  { %1179 = vtanh.f32 %v106_v10  ;;  %v1017_v14 = vmul.f32 -1.442695, %v106_v10 }
  0xd0   :  { %1181 = vpow2.f32 %v1017_v14 }
  0xdb   :  { %v1180_v12 = vpop.eup %1179 }
  0xdc   :  { %123 = vrot.lane.b32.xlu0 %v1180_v12, %s1245_s9 }
  0xdd   :  { %v1182_v15 = vpop.eup %1181 }
  0xde   :  { %v112_v16 = vadd.f32 1.0, %v1182_v15 }
  0xe0   :  { %118 = vrot.lane.b32.xlu0 %v116_v13, %s1246_s10  ;;  %1183 = vrcp.f32 %v112_v16  ;;  %v1026_v16 = vld [vmem:[%s1530_s0 + $0x6] sm:$0x3] }
  0xed   :  { %v1184_v17 = vpop.eup %1183 }
 0x14e   :  { %v124_v18 = vpop.permute.xlu0 %123 }
 0x14f   :  { %v126_v19 = vmul.f32 %v1184_v17, %v124_v18 }
 0x151   :  { %128 = vrot.lane.b32.xlu1 %v126_v19, %s1246_s10 }
 0x152   :  { %v119_v20 = vpop.permute.xlu0 %118 }
 0x153   :  { %v121_v21 = vmul.f32 %v1184_v17, %v119_v20 }
 0x1c3   :  { %v129_v22 = vpop.permute.xlu1 %128 }
 0x1c4   :  { %v131_v23 = vadd.f32 %v129_v22, %v121_v21 }
 0x1c6   :  { %1185 = vtanh.f32 %v131_v23 }
 0x1d3   :  { %v1186_v24 = vpop.eup %1185 }
 0x1d4   :  { %134 = vrot.lane.b32.xlu1 %v1186_v24, %s1245_s9 }
 0x1d8   :  { %139 = vrot.lane.b32.xlu1 %v131_v23, %s1247_s2 }
 0x246   :  { %v135_v25 = vpop.permute.xlu1 %134 }
 0x247   :  { %v137_v26 = vmul.f32 %v1184_v17, %v135_v25 }
 0x249   :  { %145 = vrot.lane.b32.xlu0 %v137_v26, %s1246_s10 }
 0x24a   :  { %v140_v27 = vpop.permute.xlu1 %139 }
 0x24b   :  { %143 = vst.msk [vmem:[#allocation3] sm:$0x3] %vm25_vm0, %v140_v27 }
 0x252   :  { %v237_v28 = vld [vmem:[#allocation3] sm:$0x3] }
 0x253   :  { %239 = vrot.lane.b32.xlu1 %v237_v28, %s1246_s10 }
 0x2bb   :  { %v146_v29 = vpop.permute.xlu0 %145 }
 0x2bc   :  { %148 = vst.msk [vmem:[#allocation2] sm:$0x3] %vm25_vm0, %v146_v29  ;;  %149 = vst.msk [vmem:[%s1531_s4] sm:$0x3] %vm25_vm0, %v146_v29 }
 0x2c3   :  { %v150_v30 = vld [vmem:[#allocation2] sm:$0x3] }
 0x2c4   :  { %1106 = vmatmul.mubr.msk.f32.vlgmr.msra.gmra.mxu1 %vm35_vm2, %v150_v30 }
 0x2c5   :  { %1120 = vmatpush3.msra.mxu1 %v1287_v1  ;;  %1127 = vmatprep.mubr.msk.f32.mxu1 %vm1244_vm1, %v1243_v0  ;;  %v240_v42 = vpop.permute.xlu1 %239 }
 0x2c6   :  { %1121 = vmatprep.subr.mxu1 %v1243_v0 }
 0x2c7   :  { %1122 = vmatpush3.msra.mxu1 %v1292_v2 }
 0x2c8   :  { %1123 = vmatprep.subr.mxu1 %v1243_v0 }
 0x2c9   :  { %1124 = vmatpush3.msra.mxu1 %v1305_v4 }
 0x2ca   :  { %1125 = vmatprep.subr.mxu1 %v1243_v0 }
 0x2cb   :  { %1126 = vmatpush3.msra.mxu1 %v1315_v5 }
 0x2cc   :  { %1141 = vmatprep.subr.mxu1 %v1243_v0 }
 0x384   :  { %v226_v32 = vpop.f32.mrf.mxu1 }
 0x385   :  { %v227_v33 = vadd.f32 %v1018_v31, %v226_v32 }
 0x386   :  { %v1107_v34 = vpop.f32.mrf.mxu1 }
 0x387   :  { %1187 = vtanh.f32 %v227_v33  ;;  %v1020_v36 = vmul.f32 -1.442695, %v227_v33 }
 0x389   :  { %1189 = vpow2.f32 %v1020_v36 }
 0x394   :  { %v1188_v35 = vpop.eup %1187 }
 0x395   :  { %244 = vrot.lane.b32.xlu0 %v1188_v35, %s1245_s9 }
 0x396   :  { %v1190_v37 = vpop.eup %1189 }
 0x397   :  { %v233_v38 = vadd.f32 1.0, %v1190_v37 }
 0x399   :  { %1191 = vrcp.f32 %v233_v38  ;;  %v1030_v38 = vld [vmem:[%s1530_s0 + $0x8] sm:$0x3] }
 0x3a6   :  { %v1192_v39 = vpop.eup %1191 }
 0x3a7   :  { %v242_v43 = vmul.f32 %v1192_v39, %v240_v42 }
 0x407   :  { %v245_v40 = vpop.permute.xlu0 %244 }
 0x408   :  { %v247_v41 = vmul.f32 %v1192_v39, %v245_v40 }
 0x40a   :  { %249 = vrot.lane.b32.xlu0 %v247_v41, %s1246_s10 }
 0x47c   :  { %v250_v44 = vpop.permute.xlu0 %249 }
 0x47d   :  { %v252_v45 = vadd.f32 %v250_v44, %v242_v43 }
 0x47f   :  { %1193 = vtanh.f32 %v252_v45 }
 0x48c   :  { %v1194_v46 = vpop.eup %1193 }
 0x48d   :  { %255 = vrot.lane.b32.xlu1 %v1194_v46, %s1245_s9 }
 0x491   :  { %260 = vrot.lane.b32.xlu1 %v252_v45, %s1247_s2 }
 0x4ff   :  { %v256_v47 = vpop.permute.xlu1 %255 }
 0x500   :  { %v258_v48 = vmul.f32 %v1192_v39, %v256_v47 }
 0x502   :  { %265 = vrot.lane.b32.xlu0 %v258_v48, %s1246_s10 }
 0x503   :  { %v261_v49 = vpop.permute.xlu1 %260 }
 0x504   :  { %263 = vst.msk [vmem:[#allocation3] sm:$0x3] %vm25_vm0, %v261_v49 }
 0x50b   :  { %v358_v50 = vld [vmem:[#allocation3] sm:$0x3] }
 0x50c   :  { %360 = vrot.lane.b32.xlu1 %v358_v50, %s1246_s10 }
 0x574   :  { %v266_v51 = vpop.permute.xlu0 %265 }
 0x575   :  { %268 = vst.msk [vmem:[#allocation2] sm:$0x3] %vm25_vm0, %v266_v51  ;;  %1021 = vst.msk [vmem:[%s1531_s4 + $0x2] sm:$0x3] %vm25_vm0, %v266_v51 }
 0x57c   :  { %v271_v52 = vld [vmem:[#allocation2] sm:$0x3] }
 0x57d   :  { %1117 = vmatmul.mubr.msk.f32.vlgmr.msra.gmra.mxu0 %vm35_vm2, %v271_v52 }
 0x57e   :  { %1131 = vmatpush3.msra.mxu0 %v1287_v1  ;;  %1138 = vmatprep.mubr.msk.f32.mxu0 %vm1244_vm1, %v1243_v0  ;;  %v361_v3 = vpop.permute.xlu1 %360 }
 0x57f   :  { %1132 = vmatprep.subr.mxu0 %v1243_v0 }
 0x580   :  { %1133 = vmatpush3.msra.mxu0 %v1292_v2 }
 0x581   :  { %1134 = vmatprep.subr.mxu0 %v1243_v0 }
 0x582   :  { %1135 = vmatpush3.msra.mxu0 %v1305_v4 }
 0x583   :  { %1136 = vmatprep.subr.mxu0 %v1243_v0 }
 0x584   :  { %1137 = vmatpush3.msra.mxu0 %v1315_v5 }
 0x585   :  { %1152 = vmatprep.subr.mxu0 %v1243_v0 }
 0x63d   :  { %v347_v54 = vpop.f32.mrf.mxu0 }
 0x63e   :  { %v348_v55 = vadd.f32 %v1022_v53, %v347_v54 }
 0x63f   :  { %v1118_v56 = vpop.f32.mrf.mxu0 }
 0x640   :  { %1195 = vtanh.f32 %v348_v55  ;;  %v1024_v58 = vmul.f32 -1.442695, %v348_v55 }
 0x642   :  { %1197 = vpow2.f32 %v1024_v58 }
 0x64d   :  { %v1196_v57 = vpop.eup %1195 }
 0x64e   :  { %365 = vrot.lane.b32.xlu0 %v1196_v57, %s1245_s9 }
 0x64f   :  { %v1198_v59 = vpop.eup %1197 }
 0x650   :  { %v354_v60 = vadd.f32 1.0, %v1198_v59 }
 0x652   :  { %1199 = vrcp.f32 %v354_v60  ;;  %v1034_v60 = vld [vmem:[%s1530_s0 + $0xa] sm:$0x3] }
 0x65f   :  { %v1200_v61 = vpop.eup %1199 }
 0x660   :  { %v363_v6 = vmul.f32 %v1200_v61, %v361_v3 }
 0x6c0   :  { %v366_v62 = vpop.permute.xlu0 %365 }
 0x6c1   :  { %v368_v63 = vmul.f32 %v1200_v61, %v366_v62 }
 0x6c3   :  { %370 = vrot.lane.b32.xlu0 %v368_v63, %s1246_s10 }
 0x735   :  { %v371_v7 = vpop.permute.xlu0 %370 }
 0x736   :  { %v373_v8 = vadd.f32 %v371_v7, %v363_v6 }
 0x738   :  { %1201 = vtanh.f32 %v373_v8 }
 0x745   :  { %v1202_v9 = vpop.eup %1201 }
 0x746   :  { %376 = vrot.lane.b32.xlu1 %v1202_v9, %s1245_s9 }
 0x74a   :  { %381 = vrot.lane.b32.xlu1 %v373_v8, %s1247_s2 }
 0x7b8   :  { %v377_v10 = vpop.permute.xlu1 %376 }
 0x7b9   :  { %v379_v11 = vmul.f32 %v1200_v61, %v377_v10 }
 0x7bb   :  { %386 = vrot.lane.b32.xlu0 %v379_v11, %s1246_s10 }
 0x7bc   :  { %v382_v12 = vpop.permute.xlu1 %381 }
 0x7bd   :  { %384 = vst.msk [vmem:[#allocation3] sm:$0x3] %vm25_vm0, %v382_v12 }
 0x7c4   :  { %v479_v13 = vld [vmem:[#allocation3] sm:$0x3] }
 0x7c5   :  { %481 = vrot.lane.b32.xlu1 %v479_v13, %s1246_s10 }
 0x82d   :  { %v387_v14 = vpop.permute.xlu0 %386 }
 0x82e   :  { %389 = vst.msk [vmem:[#allocation2] sm:$0x3] %vm25_vm0, %v387_v14  ;;  %1025 = vst.msk [vmem:[%s1531_s4 + $0x4] sm:$0x3] %vm25_vm0, %v387_v14 }
 0x835   :  { %v392_v15 = vld [vmem:[#allocation2] sm:$0x3] }
 0x836   :  { %1128 = vmatmul.mubr.msk.f32.vlgmr.msra.gmra.mxu1 %vm35_vm2, %v392_v15 }
 0x837   :  { %1142 = vmatpush3.msra.mxu1 %v1287_v1  ;;  %1149 = vmatprep.mubr.msk.f32.mxu1 %vm1244_vm1, %v1243_v0  ;;  %v482_v27 = vpop.permute.xlu1 %481 }
 0x838   :  { %1143 = vmatprep.subr.mxu1 %v1243_v0 }
 0x839   :  { %1144 = vmatpush3.msra.mxu1 %v1292_v2 }
 0x83a   :  { %1145 = vmatprep.subr.mxu1 %v1243_v0 }
 0x83b   :  { %1146 = vmatpush3.msra.mxu1 %v1305_v4 }
 0x83c   :  { %1147 = vmatprep.subr.mxu1 %v1243_v0 }
 0x83d   :  { %1148 = vmatpush3.msra.mxu1 %v1315_v5 }
 0x83e   :  { %1163 = vmatprep.subr.mxu1 %v1243_v0 }
 0x8f6   :  { %v468_v17 = vpop.f32.mrf.mxu1 }
 0x8f7   :  { %v469_v18 = vadd.f32 %v1026_v16, %v468_v17 }
 0x8f8   :  { %v1129_v19 = vpop.f32.mrf.mxu1 }
 0x8f9   :  { %1203 = vtanh.f32 %v469_v18  ;;  %v1028_v21 = vmul.f32 -1.442695, %v469_v18  ;;  %v1038_v18 = vld [vmem:[%s1530_s0 + $0xc] sm:$0x3] }
 0x8fb   :  { %1205 = vpow2.f32 %v1028_v21 }
 0x906   :  { %v1204_v20 = vpop.eup %1203 }
 0x907   :  { %486 = vrot.lane.b32.xlu0 %v1204_v20, %s1245_s9 }
 0x908   :  { %v1206_v22 = vpop.eup %1205 }
 0x909   :  { %v475_v23 = vadd.f32 1.0, %v1206_v22 }
 0x90b   :  { %1207 = vrcp.f32 %v475_v23 }
 0x918   :  { %v1208_v24 = vpop.eup %1207 }
 0x919   :  { %v484_v28 = vmul.f32 %v1208_v24, %v482_v27 }
 0x979   :  { %v487_v25 = vpop.permute.xlu0 %486 }
 0x97a   :  { %v489_v26 = vmul.f32 %v1208_v24, %v487_v25 }
 0x97c   :  { %491 = vrot.lane.b32.xlu0 %v489_v26, %s1246_s10 }
 0x9ee   :  { %v492_v29 = vpop.permute.xlu0 %491 }
 0x9ef   :  { %v494_v30 = vadd.f32 %v492_v29, %v484_v28 }
 0x9f1   :  { %1209 = vtanh.f32 %v494_v30 }
 0x9fe   :  { %v1210_v31 = vpop.eup %1209 }
 0x9ff   :  { %497 = vrot.lane.b32.xlu1 %v1210_v31, %s1245_s9 }
 0xa03   :  { %502 = vrot.lane.b32.xlu1 %v494_v30, %s1247_s2 }
 0xa71   :  { %v498_v32 = vpop.permute.xlu1 %497 }
 0xa72   :  { %v500_v33 = vmul.f32 %v1208_v24, %v498_v32 }
 0xa74   :  { %507 = vrot.lane.b32.xlu0 %v500_v33, %s1246_s10 }
 0xa75   :  { %v503_v34 = vpop.permute.xlu1 %502 }
 0xa76   :  { %505 = vst.msk [vmem:[#allocation3] sm:$0x3] %vm25_vm0, %v503_v34 }
 0xa7d   :  { %v600_v35 = vld [vmem:[#allocation3] sm:$0x3] }
 0xa7e   :  { %602 = vrot.lane.b32.xlu1 %v600_v35, %s1246_s10 }
 0xae6   :  { %v508_v36 = vpop.permute.xlu0 %507 }
 0xae7   :  { %510 = vst.msk [vmem:[#allocation2] sm:$0x3] %vm25_vm0, %v508_v36  ;;  %1029 = vst.msk [vmem:[%s1531_s4 + $0x6] sm:$0x3] %vm25_vm0, %v508_v36 }
 0xaee   :  { %v513_v37 = vld [vmem:[#allocation2] sm:$0x3] }
 0xaef   :  { %1139 = vmatmul.mubr.msk.f32.vlgmr.msra.gmra.mxu0 %vm35_vm2, %v513_v37 }
 0xaf0   :  { %1153 = vmatpush3.msra.mxu0 %v1287_v1  ;;  %1160 = vmatprep.mubr.msk.f32.mxu0 %vm1244_vm1, %v1243_v0  ;;  %v603_v49 = vpop.permute.xlu1 %602 }
 0xaf1   :  { %1154 = vmatprep.subr.mxu0 %v1243_v0 }
 0xaf2   :  { %1155 = vmatpush3.msra.mxu0 %v1292_v2 }
 0xaf3   :  { %1156 = vmatprep.subr.mxu0 %v1243_v0 }
 0xaf4   :  { %1157 = vmatpush3.msra.mxu0 %v1305_v4 }
 0xaf5   :  { %1158 = vmatprep.subr.mxu0 %v1243_v0 }
 0xaf6   :  { %1159 = vmatpush3.msra.mxu0 %v1315_v5 }
 0xbaf   :  { %v589_v39 = vpop.f32.mrf.mxu0 }
 0xbb0   :  { %v590_v40 = vadd.f32 %v1030_v38, %v589_v39 }
 0xbb1   :  { %v1140_v41 = vpop.f32.mrf.mxu0 }
 0xbb2   :  { %1211 = vtanh.f32 %v590_v40  ;;  %v1032_v43 = vmul.f32 -1.442695, %v590_v40  ;;  %v1042_v40 = vld [vmem:[%s1530_s0 + $0xe] sm:$0x3] }
 0xbb4   :  { %1213 = vpow2.f32 %v1032_v43 }
 0xbbf   :  { %v1212_v42 = vpop.eup %1211 }
 0xbc0   :  { %607 = vrot.lane.b32.xlu0 %v1212_v42, %s1245_s9 }
 0xbc1   :  { %v1214_v44 = vpop.eup %1213 }
 0xbc2   :  { %v596_v45 = vadd.f32 1.0, %v1214_v44 }
 0xbc4   :  { %1215 = vrcp.f32 %v596_v45 }
 0xbd1   :  { %v1216_v46 = vpop.eup %1215 }
 0xbd2   :  { %v605_v50 = vmul.f32 %v1216_v46, %v603_v49 }
 0xc32   :  { %v608_v47 = vpop.permute.xlu0 %607 }
 0xc33   :  { %v610_v48 = vmul.f32 %v1216_v46, %v608_v47 }
 0xc35   :  { %612 = vrot.lane.b32.xlu0 %v610_v48, %s1246_s10 }
 0xca7   :  { %v613_v51 = vpop.permute.xlu0 %612 }
 0xca8   :  { %v615_v52 = vadd.f32 %v613_v51, %v605_v50 }
 0xcaa   :  { %1217 = vtanh.f32 %v615_v52 }
 0xcb7   :  { %v1218_v53 = vpop.eup %1217 }
 0xcb8   :  { %618 = vrot.lane.b32.xlu1 %v1218_v53, %s1245_s9 }
 0xcbc   :  { %623 = vrot.lane.b32.xlu1 %v615_v52, %s1247_s2 }
 0xd2a   :  { %v619_v54 = vpop.permute.xlu1 %618 }
 0xd2b   :  { %v621_v55 = vmul.f32 %v1216_v46, %v619_v54 }
 0xd2d   :  { %628 = vrot.lane.b32.xlu0 %v621_v55, %s1246_s10 }
 0xd2e   :  { %v624_v56 = vpop.permute.xlu1 %623 }
 0xd2f   :  { %626 = vst.msk [vmem:[#allocation3] sm:$0x3] %vm25_vm0, %v624_v56 }
 0xd36   :  { %v721_v57 = vld [vmem:[#allocation3] sm:$0x3] }
 0xd37   :  { %723 = vrot.lane.b32.xlu1 %v721_v57, %s1246_s10 }
 0xd9f   :  { %v629_v58 = vpop.permute.xlu0 %628 }
 0xda0   :  { %631 = vst.msk [vmem:[#allocation2] sm:$0x3] %vm25_vm0, %v629_v58  ;;  %1033 = vst.msk [vmem:[%s1531_s4 + $0x8] sm:$0x3] %vm25_vm0, %v629_v58 }
 0xda7   :  { %v634_v59 = vld [vmem:[#allocation2] sm:$0x3] }
 0xda8   :  { %1150 = vmatmul.mubr.msk.f32.vlgmr.msra.gmra.mxu1 %vm35_vm2, %v634_v59 }
 0xda9   :  { %1164 = vmatpush3.msra.mxu1 %v1287_v1  ;;  %1171 = vmatprep.mubr.msk.f32.mxu1 %vm1244_vm1, %v1243_v0 }
 0xdaa   :  { %1165 = vmatprep.subr.mxu1 %v1243_v0 }
 0xdab   :  { %1166 = vmatpush3.msra.mxu1 %v1292_v2 }
 0xdac   :  { %1167 = vmatprep.subr.mxu1 %v1243_v0 }
 0xdad   :  { %1168 = vmatpush3.msra.mxu1 %v1305_v4 }
 0xdae   :  { %1169 = vmatprep.subr.mxu1 %v1243_v0 }
 0xdaf   :  { %1170 = vmatpush3.msra.mxu1 %v1315_v5  ;;  %v724_v5 = vpop.permute.xlu1 %723 }
 0xe68   :  { %v710_v1 = vpop.f32.mrf.mxu1 }
 0xe69   :  { %v711_v61 = vadd.f32 %v1034_v60, %v710_v1 }
 0xe6a   :  { %v1151_v62 = vpop.f32.mrf.mxu1 }
 0xe6b   :  { %1219 = vtanh.f32 %v711_v61  ;;  %v1036_v2 = vmul.f32 -1.442695, %v711_v61 }
 0xe6d   :  { %1221 = vpow2.f32 %v1036_v2 }
 0xe78   :  { %v1220_v63 = vpop.eup %1219 }
 0xe79   :  { %728 = vrot.lane.b32.xlu0 %v1220_v63, %s1245_s9 }
 0xe7a   :  { %v1222_v3 = vpop.eup %1221 }
 0xe7b   :  { %v717_v6 = vadd.f32 1.0, %v1222_v3 }
 0xe7d   :  { %1223 = vrcp.f32 %v717_v6 }
 0xe8a   :  { %v1224_v4 = vpop.eup %1223 }
 0xe8b   :  { %v726_v8 = vmul.f32 %v1224_v4, %v724_v5 }
 0xeeb   :  { %v729_v0 = vpop.permute.xlu0 %728 }
 0xeec   :  { %v731_v7 = vmul.f32 %v1224_v4, %v729_v0 }
 0xeee   :  { %733 = vrot.lane.b32.xlu0 %v731_v7, %s1246_s10 }
 0xf60   :  { %v734_v9 = vpop.permute.xlu0 %733 }
 0xf61   :  { %v736_v10 = vadd.f32 %v734_v9, %v726_v8 }
 0xf63   :  { %1225 = vtanh.f32 %v736_v10 }
 0xf70   :  { %v1226_v11 = vpop.eup %1225 }
 0xf71   :  { %739 = vrot.lane.b32.xlu1 %v1226_v11, %s1245_s9 }
 0xf75   :  { %744 = vrot.lane.b32.xlu1 %v736_v10, %s1247_s2 }
 0xfe3   :  { %v740_v12 = vpop.permute.xlu1 %739 }
 0xfe4   :  { %v742_v13 = vmul.f32 %v1224_v4, %v740_v12 }
 0xfe6   :  { %749 = vrot.lane.b32.xlu0 %v742_v13, %s1246_s10 }
 0xfe7   :  { %v745_v14 = vpop.permute.xlu1 %744 }
 0xfe8   :  { %747 = vst.msk [vmem:[#allocation3] sm:$0x3] %vm25_vm0, %v745_v14 }
 0xfef   :  { %v842_v15 = vld [vmem:[#allocation3] sm:$0x3] }
 0xff0   :  { %844 = vrot.lane.b32.xlu1 %v842_v15, %s1246_s10 }
0x1058   :  { %v750_v16 = vpop.permute.xlu0 %749 }
0x1059   :  { %752 = vst.msk [vmem:[#allocation2] sm:$0x3] %vm25_vm0, %v750_v16  ;;  %1037 = vst.msk [vmem:[%s1531_s4 + $0xa] sm:$0x3] %vm25_vm0, %v750_v16 }
0x1060   :  { %v755_v17 = vld [vmem:[#allocation2] sm:$0x3] }
0x1061   :  { %1161 = vmatmul.mubr.msk.f32.vlgmr.msra.gmra.mxu0 %vm35_vm2, %v755_v17 }
0x1062   :  { %v845_v29 = vpop.permute.xlu1 %844 }
0x1121   :  { %v831_v19 = vpop.f32.mrf.mxu0 }
0x1122   :  { %v832_v20 = vadd.f32 %v1038_v18, %v831_v19 }
0x1123   :  { %v1162_v21 = vpop.f32.mrf.mxu0 }
0x1124   :  { %1227 = vtanh.f32 %v832_v20  ;;  %v1040_v23 = vmul.f32 -1.442695, %v832_v20 }
0x1126   :  { %1229 = vpow2.f32 %v1040_v23 }
0x1131   :  { %v1228_v22 = vpop.eup %1227 }
0x1132   :  { %849 = vrot.lane.b32.xlu0 %v1228_v22, %s1245_s9 }
0x1133   :  { %v1230_v24 = vpop.eup %1229 }
0x1134   :  { %v838_v25 = vadd.f32 1.0, %v1230_v24 }
0x1136   :  { %1231 = vrcp.f32 %v838_v25 }
0x1143   :  { %v1232_v26 = vpop.eup %1231 }
0x1144   :  { %v847_v30 = vmul.f32 %v1232_v26, %v845_v29 }
0x11a4   :  { %v850_v27 = vpop.permute.xlu0 %849 }
0x11a5   :  { %v852_v28 = vmul.f32 %v1232_v26, %v850_v27 }
0x11a7   :  { %854 = vrot.lane.b32.xlu0 %v852_v28, %s1246_s10 }
0x1219   :  { %v855_v31 = vpop.permute.xlu0 %854 }
0x121a   :  { %v857_v32 = vadd.f32 %v855_v31, %v847_v30 }
0x121c   :  { %1233 = vtanh.f32 %v857_v32 }
0x1229   :  { %v1234_v33 = vpop.eup %1233 }
0x122a   :  { %860 = vrot.lane.b32.xlu1 %v1234_v33, %s1245_s9 }
0x122e   :  { %865 = vrot.lane.b32.xlu1 %v857_v32, %s1247_s2 }
0x129c   :  { %v861_v34 = vpop.permute.xlu1 %860 }
0x129d   :  { %v863_v35 = vmul.f32 %v1232_v26, %v861_v34 }
0x129f   :  { %870 = vrot.lane.b32.xlu0 %v863_v35, %s1246_s10 }
0x12a0   :  { %v866_v36 = vpop.permute.xlu1 %865 }
0x12a1   :  { %868 = vst.msk [vmem:[#allocation3] sm:$0x3] %vm25_vm0, %v866_v36 }
0x12a8   :  { %v963_v37 = vld [vmem:[#allocation3] sm:$0x3] }
0x12a9   :  { %965 = vrot.lane.b32.xlu1 %v963_v37, %s1246_s10 }
0x1311   :  { %v871_v38 = vpop.permute.xlu0 %870 }
0x1312   :  { %873 = vst.msk [vmem:[#allocation2] sm:$0x3] %vm25_vm0, %v871_v38  ;;  %1041 = vst.msk [vmem:[%s1531_s4 + $0xc] sm:$0x3] %vm25_vm0, %v871_v38 }
0x1319   :  { %v876_v39 = vld [vmem:[#allocation2] sm:$0x3] }
0x131a   :  { %1172 = vmatmul.mubr.msk.f32.vlgmr.msra.gmra.mxu1 %vm35_vm2, %v876_v39 }
0x131b   :  { %v966_v51 = vpop.permute.xlu1 %965 }
0x13da   :  { %v952_v41 = vpop.f32.mrf.mxu1 }
0x13db   :  { %v953_v42 = vadd.f32 %v1042_v40, %v952_v41 }
0x13dc   :  { %v1173_v43 = vpop.f32.mrf.mxu1 }
0x13dd   :  { %1235 = vtanh.f32 %v953_v42  ;;  %v1044_v45 = vmul.f32 -1.442695, %v953_v42 }
0x13df   :  { %1237 = vpow2.f32 %v1044_v45 }
0x13ea   :  { %v1236_v44 = vpop.eup %1235 }
0x13eb   :  { %970 = vrot.lane.b32.xlu0 %v1236_v44, %s1245_s9 }
0x13ec   :  { %v1238_v46 = vpop.eup %1237 }
0x13ed   :  { %v959_v47 = vadd.f32 1.0, %v1238_v46 }
0x13ef   :  { %1239 = vrcp.f32 %v959_v47 }
0x13fc   :  { %v1240_v48 = vpop.eup %1239 }
0x13fd   :  { %v968_v52 = vmul.f32 %v1240_v48, %v966_v51 }
0x145d   :  { %v971_v49 = vpop.permute.xlu0 %970 }
0x145e   :  { %v973_v50 = vmul.f32 %v1240_v48, %v971_v49 }
0x1460   :  { %975 = vrot.lane.b32.xlu0 %v973_v50, %s1246_s10 }
0x14d2   :  { %v976_v53 = vpop.permute.xlu0 %975 }
0x14d3   :  { %v978_v54 = vadd.f32 %v976_v53, %v968_v52 }
0x14d5   :  { %1241 = vtanh.f32 %v978_v54  ;;  %986 = vrot.lane.b32.xlu0 %v978_v54, %s1247_s2 }
0x14e2   :  { %v1242_v55 = vpop.eup %1241 }
0x14e3   :  { %981 = vrot.lane.b32.xlu1 %v1242_v55, %s1245_s9 }
0x1547   :  { %v987_v56 = vpop.permute.xlu0 %986 }
0x1548   :  { %989 = vst.msk [vmem:[#allocation3] sm:$0x3] %vm25_vm0, %v987_v56 }
0x154f   :  { %v1002_v57 = vld [vmem:[#allocation3] sm:$0x3] }
0x1550   :  { %1003 = vst.msk [vmem:[%s1532_s6] sm:$0x3] %vm25_vm0, %v1002_v57 }
0x1555   :  { %v982_v58 = vpop.permute.xlu1 %981 }
0x1556   :  { %v984_v59 = vmul.f32 %v1240_v48, %v982_v58 }
0x1558   :  { %991 = vrot.lane.b32.xlu1 %v984_v59, %s1246_s10 }
0x15ca   :  { %v992_v60 = vpop.permute.xlu1 %991 }
0x15cb   :  { %994 = vst.msk [vmem:[#allocation2] sm:$0x3] %vm25_vm0, %v992_v60  ;;  %1045 = vst.msk [vmem:[%s1531_s4 + $0xe] sm:$0x3] %vm25_vm0, %v992_v60 }
0x15d2   :  { %v1000_v1 = vld [vmem:[#allocation2] sm:$0x3] }
0x15d3   :  { %1001 = vst.msk [vmem:[%s1533_s5] sm:$0x3] %vm25_vm0, %v1000_v1 }

</bundles_post_ra>
